<compile_context>
chip_gen: v6e
topology: v6e:2x2x1
jax: 0.10.0
libtpu: 0.0.40
codegen_flags: <defaults>
</compile_context>

<pallas_src>
from functools import partial

import jax
import jax.numpy as jnp
from jax.experimental import pallas as pl
from jax.experimental.pallas import tpu as pltpu

NEG_SLOPE = 0.01          # nn.LeakyReLU default negative_slope
BN_EPS = 1e-5             # nn.BatchNorm2d default eps
_VMEM_LIMIT = 32 * 1024 * 1024     # per-step working set here is a few MiB at most;
                                   # 32 MiB is <= the scoped ceiling on v5e/v6e/v7x.
_FUSE_SLAB_BYTES_MAX = 2 * 1024 * 1024   # fuse everything in VMEM when one f32 slab
                                         # is <= 2 MiB (live set stays << 32 MiB).


# ----------------------------------------------------------------------------- helpers


def _banded_weights(w_hwio, W):
    """Fold the 3 x-taps of an HWIO (3,3,Cin,Cout) conv weight into banded matrices.

    Returns (3, W*Cin, W*Cout) bf16 with
      B[ky, wi*Cin+ci, wo*Cout+co] = w[ky, wi-wo+1, ci, co]  if |wi-wo| <= 1 else 0
    so that   y_slab[r] = sum_ky  x_slab[r + ky - 1] @ B[ky]   realizes the 3x3
    "same"-padded cross-correlation in the (rows, W*C) slab layout (x-padding is
    absorbed by the band; y-padding handled by row masks in the kernels).
    """
    _, _, cin, cout = w_hwio.shape
    wi = jnp.arange(W)[:, None]
    wo = jnp.arange(W)[None, :]
    dx = wi - wo                                     # (W, W)
    valid = jnp.abs(dx) <= 1
    kx = jnp.clip(dx + 1, 0, 2)
    band = jnp.where(valid[None, :, :, None, None], w_hwio[:, kx, :, :], 0.0)
    band = band.transpose(0, 1, 3, 2, 4).reshape(3, W * cin, W * cout)
    return band.astype(jnp.bfloat16)


def _conv3x3_slab(a, w_ref, m_up, m_dn):
    """3x3 conv of an f32 slab `a` (rows, W*Cin) with banded weights w_ref (3,WCin,WCout).

    m_up / m_dn are (rows, 1) bool masks that kill rows whose y-neighbour lies in a
    different image (row % H == 0 / H-1), so many images can share one block.
    """
    rows = a.shape[0]
    up = jnp.where(m_up, pltpu.roll(a, 1, axis=0), 0.0)            # row r sees a[r-1]
    dn = jnp.where(m_dn, pltpu.roll(a, rows - 1, axis=0), 0.0)     # row r sees a[r+1]
    acc = jnp.dot(a.astype(jnp.bfloat16), w_ref[1],
                  preferred_element_type=jnp.float32)
    acc += jnp.dot(up.astype(jnp.bfloat16), w_ref[0],
                   preferred_element_type=jnp.float32)
    acc += jnp.dot(dn.astype(jnp.bfloat16), w_ref[2],
                   preferred_element_type=jnp.float32)
    return acc


def _row_masks(rows, H):
    r = jax.lax.broadcasted_iota(jnp.int32, (rows, 1), 0)
    return (r % H) != 0, (r % H) != (H - 1)


# ----------------------------------------------------------------------------- fused path


def _make_fused_kernel(H, W, C, inv_count):
    """Single-kernel Block forward: the whole batch slab is resident in VMEM."""
    WC = W * C

    def kernel(x_ref, w1_ref, w2_ref, g1_ref, b1_ref, g2_ref, b2_ref, o_ref):
        x = x_ref[...]                               # (rows, WC) f32
        rows = x.shape[0]
        m_up, m_dn = _row_masks(rows, H)

        # Lane-group sum matrix: G[l, l'] = 1 iff lanes l, l' carry the same channel.
        # (1, WC) @ G gives the per-channel sum already replicated back to every lane.
        li = jax.lax.broadcasted_iota(jnp.int32, (WC, WC), 0)
        lj = jax.lax.broadcasted_iota(jnp.int32, (WC, WC), 1)
        gsum = ((li % C) == (lj % C)).astype(jnp.float32)

        def bn_lrelu(y, g_row, b_row):
            # Exact two-pass batch statistics (resident in VMEM, so the extra pass
            # is cheap) -> no E[y^2]-mean^2 cancellation.
            mean = jnp.dot(jnp.sum(y, axis=0, keepdims=True), gsum,
                           preferred_element_type=jnp.float32) * inv_count
            d = y - mean
            var = jnp.dot(jnp.sum(d * d, axis=0, keepdims=True), gsum,
                          preferred_element_type=jnp.float32) * inv_count
            a = d * (g_row * jax.lax.rsqrt(var + BN_EPS)) + b_row
            return jnp.where(a > 0, a, NEG_SLOPE * a)

        a1 = bn_lrelu(_conv3x3_slab(x, w1_ref, m_up, m_dn), g1_ref[...], b1_ref[...])
        a2 = bn_lrelu(_conv3x3_slab(a1, w2_ref, m_up, m_dn), g2_ref[...], b2_ref[...])
        o_ref[...] = a2 + x

    return kernel


# ----------------------------------------------------------------------------- streaming path


def _make_conv_stats_kernel(H, with_bn):
    """Row-batched kernel: [optional BN+LeakyReLU] -> 3x3 conv -> bf16 output + f32 stats.

    Stats are PARTIAL per grid step (written to a per-step slot), so the grid can be
    fully "parallel" (no shared accumulator; both v7x TensorCores usable)."""

    def conv_stats(a, w_ref, y_ref, ssum_ref, ssq_ref):
        rows = a.shape[0]
        m_up, m_dn = _row_masks(rows, H)
        acc = _conv3x3_slab(a, w_ref, m_up, m_dn)          # f32 (rows, WC)
        y_ref[...] = acc.astype(y_ref.dtype)               # bf16 intermediate to HBM
        ssum_ref[...] = jnp.sum(acc, axis=0, keepdims=True)[None]        # (1,1,WC) f32
        ssq_ref[...] = jnp.sum(acc * acc, axis=0, keepdims=True)[None]

    if with_bn:
        def kernel(x_ref, sc_ref, sh_ref, w_ref, y_ref, ssum_ref, ssq_ref):
            a = x_ref[...].astype(jnp.float32) * sc_ref[...] + sh_ref[...]   # BN affine
            a = jnp.where(a > 0, a, NEG_SLOPE * a)                           # LeakyReLU
            conv_stats(a, w_ref, y_ref, ssum_ref, ssq_ref)
    else:
        def kernel(x_ref, w_ref, y_ref, ssum_ref, ssq_ref):
            conv_stats(x_ref[...], w_ref, y_ref, ssum_ref, ssq_ref)

    return kernel


def _bn_residual_kernel(y_ref, sc_ref, sh_ref, x_ref, o_ref):
    """BN2 (per-lane affine) + LeakyReLU + residual add.  Purely elementwise."""
    a = y_ref[...].astype(jnp.float32) * sc_ref[...] + sh_ref[...]
    a = jnp.where(a > 0, a, NEG_SLOPE * a)
    o_ref[...] = a + x_ref[...]


def _bn_affine(ssum, ssq, gamma, beta, count, W, C):
    """(nsteps,1,W*C) partial sum / sumsq -> per-lane BN scale & shift rows (wrapper glue)."""
    ch_sum = ssum.sum(axis=(0, 1)).reshape(W, C).sum(axis=0)
    ch_sq = ssq.sum(axis=(0, 1)).reshape(W, C).sum(axis=0)
    mean = ch_sum / count
    var = ch_sq / count - mean * mean                 # biased batch variance
    scale = gamma * jax.lax.rsqrt(var + BN_EPS)
    shift = beta - mean * scale
    return (jnp.tile(scale, W).reshape(1, W * C),
            jnp.tile(shift, W).reshape(1, W * C))


def _pick_b_blk(N, H, target_rows=1024):
    """Largest divisor of N with b_blk*H <= target_rows rows per grid step
    (rows kept a multiple of 16 for clean f32/bf16 tiling); falls back to N."""
    best = N
    for d in range(1, N + 1):
        if N % d == 0 and d * H <= target_rows and (d * H) % 16 == 0:
            best = d
    return best


# ----------------------------------------------------------------------------- forward


@partial(jax.jit, static_argnames=("force_streaming", "b_blk"))
def block_forward(x_nchw, params, force_streaming=False, b_blk=None):
    """Forward pass of Block (training-mode BatchNorm).  NCHW in / NCHW out."""
    w1, _b1, g1, be1, w2, _b2, g2, be2 = params   # conv biases cancel under training BN
    N, Cin, H, W = x_nchw.shape
    Cout = w1.shape[3]
    if Cin != Cout:
        raise ValueError("residual add (out2 + x) requires in_ch == ou_ch")
    WC = W * Cout
    count = N * H * W
    M = N * H

    # channels-last, lane-dense slab: row = n*H + h, lane = w*C + c
    x_slab = jnp.transpose(x_nchw, (0, 2, 3, 1)).reshape(M, W * Cin)
    w1b = _banded_weights(w1, W)                       # (3, W*Cin, W*Cout) bf16
    w2b = _banded_weights(w2, W)

    fused = (not force_streaming) and (M * WC * 4 <= _FUSE_SLAB_BYTES_MAX)

    if fused:
        # ---- single fully-fused kernel: everything resident in VMEM -------------
        g1r = jnp.tile(g1, W).reshape(1, WC)
        b1r = jnp.tile(be1, W).reshape(1, WC)
        g2r = jnp.tile(g2, W).reshape(1, WC)
        b2r = jnp.tile(be2, W).reshape(1, WC)
        slab_spec = pl.BlockSpec((M, WC), lambda i: (0, 0))
        row_spec = pl.BlockSpec((1, WC), lambda i: (0, 0))
        w_spec = pl.BlockSpec((3, WC, WC), lambda i: (0, 0, 0))
        out_slab = pl.pallas_call(
            _make_fused_kernel(H, W, Cout, 1.0 / count),
            grid=(1,),
            in_specs=[slab_spec, w_spec, w_spec, row_spec, row_spec, row_spec, row_spec],
            out_specs=slab_spec,
            out_shape=jax.ShapeDtypeStruct((M, WC), jnp.float32),
            compiler_params=pltpu.CompilerParams(vmem_limit_bytes=_VMEM_LIMIT),
        )(x_slab, w1b, w2b, g1r, b1r, g2r, b2r)
    else:
        # ---- streaming path: row-batched grid, bf16 intermediates ---------------
        if b_blk is None:
            b_blk = _pick_b_blk(N, H)
        if N % b_blk != 0:
            raise ValueError(f"b_blk={b_blk} must divide the batch N={N}")
        nsteps = N // b_blk
        rows_blk = b_blk * H

        img_spec = pl.BlockSpec((rows_blk, WC), lambda n: (n, 0))
        row_spec = pl.BlockSpec((1, WC), lambda n: (0, 0))
        w_spec = pl.BlockSpec((3, WC, WC), lambda n: (0, 0, 0))
        stat_spec = pl.BlockSpec((1, 1, WC), lambda n: (n, 0, 0))

        img_bf16 = jax.ShapeDtypeStruct((M, WC), jnp.bfloat16)
        img_f32 = jax.ShapeDtypeStruct((M, WC), jnp.float32)
        stat_sds = jax.ShapeDtypeStruct((nsteps, 1, WC), jnp.float32)
        cparams = pltpu.CompilerParams(dimension_semantics=("parallel",),
                                       vmem_limit_bytes=_VMEM_LIMIT)

        # pass 1: conv1 (bf16 out) + per-step partial BN1 statistics
        y1_raw, s1, q1 = pl.pallas_call(
            _make_conv_stats_kernel(H, with_bn=False),
            grid=(nsteps,),
            in_specs=[img_spec, w_spec],
            out_specs=(img_spec, stat_spec, stat_spec),
            out_shape=(img_bf16, stat_sds, stat_sds),
            compiler_params=cparams,
        )(x_slab, w1b)
        sc1, sh1 = _bn_affine(s1, q1, g1, be1, count, W, Cout)

        # pass 2: BN1 + LeakyReLU fused into conv2 (bf16 out) + partial BN2 stats
        y2_raw, s2, q2 = pl.pallas_call(
            _make_conv_stats_kernel(H, with_bn=True),
            grid=(nsteps,),
            in_specs=[img_spec, row_spec, row_spec, w_spec],
            out_specs=(img_spec, stat_spec, stat_spec),
            out_shape=(img_bf16, stat_sds, stat_sds),
            compiler_params=cparams,
        )(y1_raw, sc1, sh1, w2b)
        sc2, sh2 = _bn_affine(s2, q2, g2, be2, count, W, Cout)

        # pass 3: BN2 + LeakyReLU + residual add; x_slab buffer reused for the output
        out_slab = pl.pallas_call(
            _bn_residual_kernel,
            grid=(nsteps,),
            in_specs=[img_spec, row_spec, row_spec, img_spec],
            out_specs=img_spec,
            out_shape=img_f32,
            input_output_aliases={3: 0},
            compiler_params=cparams,
        )(y2_raw, sc2, sh2, x_slab)

    return jnp.transpose(out_slab.reshape(N, H, W, Cout), (0, 3, 1, 2))


# ----------------------------------------------------------------------------- params / reference


def init_params(key, in_ch, ou_ch):
    # Deterministic synthetic init (Conv2d-like uniform scale; BN gamma=1, beta=0).
    k1, k2, k3, k4 = jax.random.split(key, 4)
    s1 = 1.0 / (9.0 * in_ch) ** 0.5
    s2 = 1.0 / (9.0 * ou_ch) ** 0.5
    w1 = jax.random.uniform(k1, (3, 3, in_ch, ou_ch), jnp.float32, -s1, s1)
    b1 = jax.random.uniform(k2, (ou_ch,), jnp.float32, -s1, s1)
    w2 = jax.random.uniform(k3, (3, 3, ou_ch, ou_ch), jnp.float32, -s2, s2)
    b2 = jax.random.uniform(k4, (ou_ch,), jnp.float32, -s2, s2)
    g1 = jnp.ones((ou_ch,), jnp.float32)
    be1 = jnp.zeros((ou_ch,), jnp.float32)
    g2 = jnp.ones((ou_ch,), jnp.float32)
    be2 = jnp.zeros((ou_ch,), jnp.float32)
    return (w1, b1, g1, be1, w2, b2, g2, be2)


def ref_block(x_nchw, params):
    # Pure-JAX f32 reference (mirrors the PyTorch forward in training mode).
    w1, b1, g1, be1, w2, b2, g2, be2 = params
    x = jnp.transpose(x_nchw, (0, 2, 3, 1))

    def conv(v, w, b):
        y = jax.lax.conv_general_dilated(
            v, w, window_strides=(1, 1), padding='SAME',
            dimension_numbers=('NHWC', 'HWIO', 'NHWC'),
            precision=jax.lax.Precision.HIGHEST)
        return y + b

    def bn(y, g, be):
        mean = jnp.mean(y, axis=(0, 1, 2), keepdims=True)
        var = jnp.mean((y - mean) ** 2, axis=(0, 1, 2), keepdims=True)
        return (y - mean) * jax.lax.rsqrt(var + BN_EPS) * g + be

    lrelu = lambda y: jnp.where(y > 0, y, NEG_SLOPE * y)
    o1 = lrelu(bn(conv(x, w1, b1), g1, be1))
    o2 = lrelu(bn(conv(o1, w2, b2), g2, be2))
    return jnp.transpose(o2 + x, (0, 3, 1, 2))


# ----------------------------------------------------------------------------- main


if __name__ == "__main__":
    key = jax.random.PRNGKey(0)
    k_x, k_p, k_x2 = jax.random.split(key, 3)

    # in_ch == ou_ch is required by the module's residual connection.
    # C=8, W=16 -> W*C = 128: exactly lane-dense slabs inside the kernels.
    N, C, H, W = 2, 8, 16, 16
    x = jax.random.normal(k_x, (N, C, H, W), dtype=jnp.float32)
    params = init_params(k_p, C, C)

    # --- fully fused single-kernel path (small batch) ---------------------------
    out = jax.block_until_ready(block_forward(x, params))
    ref = jax.block_until_ready(ref_block(x, params))
    assert out.shape == x.shape and out.dtype == jnp.float32
    err = jnp.abs(out - ref)
    max_err, mean_err = float(jnp.max(err)), float(jnp.mean(err))
    # Tolerance budget: bf16 MXU operands (f32 accumulation) through two conv+BN
    # layers; BN renormalizes so errors stay relative (~0.5-1%) on O(1-4) outputs.
    if max_err > 1e-1 or mean_err > 2.5e-2:
        raise AssertionError(
            f"fused path mismatch vs reference: max {max_err:.3e} mean {mean_err:.3e}")

    # --- streaming path (row-batched grid, bf16 intermediates, aliased output) --
    x_big = jax.random.normal(k_x2, (8, C, H, W), dtype=jnp.float32)
    out_s = jax.block_until_ready(
        block_forward(x_big, params, force_streaming=True, b_blk=2))
    ref_s = jax.block_until_ready(ref_block(x_big, params))
    assert out_s.shape == x_big.shape and out_s.dtype == jnp.float32
    err_s = jnp.abs(out_s - ref_s)
    max_s, mean_s = float(jnp.max(err_s)), float(jnp.mean(err_s))
    # Slightly looser: intermediates round-trip HBM in bf16 on this path.
    if max_s > 1.5e-1 or mean_s > 2.5e-2:
        raise AssertionError(
            f"streaming path mismatch vs reference: max {max_s:.3e} mean {mean_s:.3e}")

    print("KERNEL_OK")
</pallas_src>

<mosaic_0001>
module attributes {stable_mosaic.version = 11 : i64} {
  func.func @kernel(%arg0: i32, %arg1: memref<32x128xf32, #tpu.memory_space<vmem>>, %arg2: memref<3x128x128xbf16, #tpu.memory_space<vmem>>, %arg3: memref<3x128x128xbf16, #tpu.memory_space<vmem>>, %arg4: memref<1x128xf32, #tpu.memory_space<vmem>>, %arg5: memref<1x128xf32, #tpu.memory_space<vmem>>, %arg6: memref<1x128xf32, #tpu.memory_space<vmem>>, %arg7: memref<1x128xf32, #tpu.memory_space<vmem>>, %arg8: memref<32x128xf32, #tpu.memory_space<vmem>>) attributes {dimension_semantics = [#tpu.dimension_semantics<arbitrary>], iteration_bounds = array<i64: 1>, scalar_prefetch = 0 : i64, scratch_operands = 0 : i64, tpu.core_type = #tpu.core_type<tc>, window_params = [{pipeline_mode = #tpu.pipeline_mode<synchronous>, transform_indices = @transform_0, window_bounds = array<i64: 32, 128>}, {pipeline_mode = #tpu.pipeline_mode<synchronous>, transform_indices = @transform_1, window_bounds = array<i64: 3, 128, 128>}, {pipeline_mode = #tpu.pipeline_mode<synchronous>, transform_indices = @transform_2, window_bounds = array<i64: 3, 128, 128>}, {pipeline_mode = #tpu.pipeline_mode<synchronous>, transform_indices = @transform_3, window_bounds = array<i64: 1, 128>}, {pipeline_mode = #tpu.pipeline_mode<synchronous>, transform_indices = @transform_4, window_bounds = array<i64: 1, 128>}, {pipeline_mode = #tpu.pipeline_mode<synchronous>, transform_indices = @transform_5, window_bounds = array<i64: 1, 128>}, {pipeline_mode = #tpu.pipeline_mode<synchronous>, transform_indices = @transform_6, window_bounds = array<i64: 1, 128>}, {pipeline_mode = #tpu.pipeline_mode<synchronous>, transform_indices = @transform_7, window_bounds = array<i64: 32, 128>}]} {
    %c0 = arith.constant 0 : index
    %c0_0 = arith.constant 0 : index
    %0 = vector.load %arg1[%c0, %c0_0] : memref<32x128xf32, #tpu.memory_space<vmem>>, vector<32x128xf32>
    %1 = tpu.iota {dimensions = array<i32: 0>} : vector<32x1xi32>
    %c16_i32 = arith.constant 16 : i32
    %c0_i32 = arith.constant 0 : i32
    %2 = arith.cmpi eq, %c16_i32, %c0_i32 : i32
    %c1_i32 = arith.constant 1 : i32
    %3 = arith.select %2, %c1_i32, %c16_i32 : i32
    %4 = vector.broadcast %3 : i32 to vector<32x1xi32>
    %5 = arith.remsi %1, %4 : vector<32x1xi32>
    %c0_i32_1 = arith.constant 0 : i32
    %6 = vector.broadcast %c0_i32_1 : i32 to vector<32x1xi32>
    %7 = arith.cmpi ne, %5, %6 : vector<32x1xi32>
    %c0_i32_2 = arith.constant 0 : i32
    %8 = vector.broadcast %c0_i32_2 : i32 to vector<32x1xi32>
    %9 = arith.cmpi slt, %5, %8 : vector<32x1xi32>
    %c0_i32_3 = arith.constant 0 : i32
    %10 = arith.cmpi slt, %3, %c0_i32_3 : i32
    %11 = vector.broadcast %10 : i1 to vector<32x1xi1>
    %12 = vector.broadcast %11 : vector<32x1xi1> to vector<32x1xi1>
    %13 = arith.xori %9, %12 : vector<32x1xi1>
    %14 = arith.andi %13, %7 : vector<32x1xi1>
    %15 = vector.broadcast %3 : i32 to vector<32x1xi32>
    %16 = arith.addi %5, %15 : vector<32x1xi32>
    %17 = arith.select %14, %16, %5 : vector<32x1xi1>, vector<32x1xi32>
    %c0_i32_4 = arith.constant 0 : i32
    %18 = vector.broadcast %c0_i32_4 : i32 to vector<32x1xi32>
    %19 = arith.cmpi ne, %17, %18 : vector<32x1xi32>
    %c16_i32_5 = arith.constant 16 : i32
    %c0_i32_6 = arith.constant 0 : i32
    %20 = arith.cmpi eq, %c16_i32_5, %c0_i32_6 : i32
    %c1_i32_7 = arith.constant 1 : i32
    %21 = arith.select %20, %c1_i32_7, %c16_i32_5 : i32
    %22 = vector.broadcast %21 : i32 to vector<32x1xi32>
    %23 = arith.remsi %1, %22 : vector<32x1xi32>
    %c0_i32_8 = arith.constant 0 : i32
    %24 = vector.broadcast %c0_i32_8 : i32 to vector<32x1xi32>
    %25 = arith.cmpi ne, %23, %24 : vector<32x1xi32>
    %c0_i32_9 = arith.constant 0 : i32
    %26 = vector.broadcast %c0_i32_9 : i32 to vector<32x1xi32>
    %27 = arith.cmpi slt, %23, %26 : vector<32x1xi32>
    %c0_i32_10 = arith.constant 0 : i32
    %28 = arith.cmpi slt, %21, %c0_i32_10 : i32
    %29 = vector.broadcast %28 : i1 to vector<32x1xi1>
    %30 = vector.broadcast %29 : vector<32x1xi1> to vector<32x1xi1>
    %31 = arith.xori %27, %30 : vector<32x1xi1>
    %32 = arith.andi %31, %25 : vector<32x1xi1>
    %33 = vector.broadcast %21 : i32 to vector<32x1xi32>
    %34 = arith.addi %23, %33 : vector<32x1xi32>
    %35 = arith.select %32, %34, %23 : vector<32x1xi1>, vector<32x1xi32>
    %c15_i32 = arith.constant 15 : i32
    %36 = vector.broadcast %c15_i32 : i32 to vector<32x1xi32>
    %37 = arith.cmpi ne, %35, %36 : vector<32x1xi32>
    %38 = tpu.iota {dimensions = array<i32: 0>} : vector<128x128xi32>
    %39 = tpu.iota {dimensions = array<i32: 1>} : vector<128x128xi32>
    %c8_i32 = arith.constant 8 : i32
    %c0_i32_11 = arith.constant 0 : i32
    %40 = arith.cmpi eq, %c8_i32, %c0_i32_11 : i32
    %c1_i32_12 = arith.constant 1 : i32
    %41 = arith.select %40, %c1_i32_12, %c8_i32 : i32
    %42 = vector.broadcast %41 : i32 to vector<128x128xi32>
    %43 = arith.remsi %38, %42 : vector<128x128xi32>
    %c0_i32_13 = arith.constant 0 : i32
    %44 = vector.broadcast %c0_i32_13 : i32 to vector<128x128xi32>
    %45 = arith.cmpi ne, %43, %44 : vector<128x128xi32>
    %c0_i32_14 = arith.constant 0 : i32
    %46 = vector.broadcast %c0_i32_14 : i32 to vector<128x128xi32>
    %47 = arith.cmpi slt, %43, %46 : vector<128x128xi32>
    %c0_i32_15 = arith.constant 0 : i32
    %48 = arith.cmpi slt, %41, %c0_i32_15 : i32
    %49 = vector.broadcast %48 : i1 to vector<128x128xi1>
    %50 = vector.broadcast %49 : vector<128x128xi1> to vector<128x128xi1>
    %51 = arith.xori %47, %50 : vector<128x128xi1>
    %52 = arith.andi %51, %45 : vector<128x128xi1>
    %53 = vector.broadcast %41 : i32 to vector<128x128xi32>
    %54 = arith.addi %43, %53 : vector<128x128xi32>
    %55 = arith.select %52, %54, %43 : vector<128x128xi1>, vector<128x128xi32>
    %c8_i32_16 = arith.constant 8 : i32
    %c0_i32_17 = arith.constant 0 : i32
    %56 = arith.cmpi eq, %c8_i32_16, %c0_i32_17 : i32
    %c1_i32_18 = arith.constant 1 : i32
    %57 = arith.select %56, %c1_i32_18, %c8_i32_16 : i32
    %58 = vector.broadcast %57 : i32 to vector<128x128xi32>
    %59 = arith.remsi %39, %58 : vector<128x128xi32>
    %c0_i32_19 = arith.constant 0 : i32
    %60 = vector.broadcast %c0_i32_19 : i32 to vector<128x128xi32>
    %61 = arith.cmpi ne, %59, %60 : vector<128x128xi32>
    %c0_i32_20 = arith.constant 0 : i32
    %62 = vector.broadcast %c0_i32_20 : i32 to vector<128x128xi32>
    %63 = arith.cmpi slt, %59, %62 : vector<128x128xi32>
    %c0_i32_21 = arith.constant 0 : i32
    %64 = arith.cmpi slt, %57, %c0_i32_21 : i32
    %65 = vector.broadcast %64 : i1 to vector<128x128xi1>
    %66 = vector.broadcast %65 : vector<128x128xi1> to vector<128x128xi1>
    %67 = arith.xori %63, %66 : vector<128x128xi1>
    %68 = arith.andi %67, %61 : vector<128x128xi1>
    %69 = vector.broadcast %57 : i32 to vector<128x128xi32>
    %70 = arith.addi %59, %69 : vector<128x128xi32>
    %71 = arith.select %68, %70, %59 : vector<128x128xi1>, vector<128x128xi32>
    %72 = arith.cmpi eq, %55, %71 : vector<128x128xi32>
    %73 = arith.extui %72 : vector<128x128xi1> to vector<128x128xi32>
    %74 = arith.sitofp %73 : vector<128x128xi32> to vector<128x128xf32>
    %c1_i32_22 = arith.constant 1 : i32
    %75 = tpu.dynamic_rotate %0 by %c1_i32_22 dim 0 : vector<32x128xf32>, i32 -> vector<32x128xf32>
    %cst = arith.constant 0.000000e+00 : f32
    %76 = vector.shape_cast %19 : vector<32x1xi1> to vector<32x1xi1>
    %77 = vector.broadcast %76 : vector<32x1xi1> to vector<32x128xi1>
    %78 = vector.broadcast %cst : f32 to vector<32x128xf32>
    %79 = arith.select %77, %75, %78 : vector<32x128xi1>, vector<32x128xf32>
    %c31_i32 = arith.constant 31 : i32
    %80 = tpu.dynamic_rotate %0 by %c31_i32 dim 0 : vector<32x128xf32>, i32 -> vector<32x128xf32>
    %cst_23 = arith.constant 0.000000e+00 : f32
    %81 = vector.shape_cast %37 : vector<32x1xi1> to vector<32x1xi1>
    %82 = vector.broadcast %81 : vector<32x1xi1> to vector<32x128xi1>
    %83 = vector.broadcast %cst_23 : f32 to vector<32x128xf32>
    %84 = arith.select %82, %80, %83 : vector<32x128xi1>, vector<32x128xf32>
    %85 = arith.truncf %0 : vector<32x128xf32> to vector<32x128xbf16>
    %c1 = arith.constant 1 : index
    %c0_24 = arith.constant 0 : index
    %c0_25 = arith.constant 0 : index
    %86 = vector.load %arg2[%c1, %c0_24, %c0_25] : memref<3x128x128xbf16, #tpu.memory_space<vmem>>, vector<1x128x128xbf16>
    %87 = vector.shape_cast %86 : vector<1x128x128xbf16> to vector<128x128xbf16>
    %cst_26 = arith.constant dense<0.000000e+00> : vector<32x128xf32>
    %88 = tpu.matmul %85, %87, %cst_26 {dimension_numbers = #tpu.dot_dimension_numbers<[1], [0], [0], [1], [0, 0, 1, 1], [], []>} : vector<32x128xbf16>, vector<128x128xbf16>, vector<32x128xf32> -> vector<32x128xf32>
    %89 = arith.truncf %79 : vector<32x128xf32> to vector<32x128xbf16>
    %c0_27 = arith.constant 0 : index
    %c0_28 = arith.constant 0 : index
    %c0_29 = arith.constant 0 : index
    %90 = vector.load %arg2[%c0_27, %c0_28, %c0_29] : memref<3x128x128xbf16, #tpu.memory_space<vmem>>, vector<1x128x128xbf16>
    %91 = vector.shape_cast %90 : vector<1x128x128xbf16> to vector<128x128xbf16>
    %cst_30 = arith.constant dense<0.000000e+00> : vector<32x128xf32>
    %92 = tpu.matmul %89, %91, %cst_30 {dimension_numbers = #tpu.dot_dimension_numbers<[1], [0], [0], [1], [0, 0, 1, 1], [], []>} : vector<32x128xbf16>, vector<128x128xbf16>, vector<32x128xf32> -> vector<32x128xf32>
    %93 = arith.addf %88, %92 : vector<32x128xf32>
    %94 = arith.truncf %84 : vector<32x128xf32> to vector<32x128xbf16>
    %c2 = arith.constant 2 : index
    %c0_31 = arith.constant 0 : index
    %c0_32 = arith.constant 0 : index
    %95 = vector.load %arg2[%c2, %c0_31, %c0_32] : memref<3x128x128xbf16, #tpu.memory_space<vmem>>, vector<1x128x128xbf16>
    %96 = vector.shape_cast %95 : vector<1x128x128xbf16> to vector<128x128xbf16>
    %cst_33 = arith.constant dense<0.000000e+00> : vector<32x128xf32>
    %97 = tpu.matmul %94, %96, %cst_33 {dimension_numbers = #tpu.dot_dimension_numbers<[1], [0], [0], [1], [0, 0, 1, 1], [], []>} : vector<32x128xbf16>, vector<128x128xbf16>, vector<32x128xf32> -> vector<32x128xf32>
    %98 = arith.addf %93, %97 : vector<32x128xf32>
    %c0_34 = arith.constant 0 : index
    %c0_35 = arith.constant 0 : index
    %99 = vector.load %arg4[%c0_34, %c0_35] : memref<1x128xf32, #tpu.memory_space<vmem>>, vector<1x128xf32>
    %c0_36 = arith.constant 0 : index
    %c0_37 = arith.constant 0 : index
    %100 = vector.load %arg5[%c0_36, %c0_37] : memref<1x128xf32, #tpu.memory_space<vmem>>, vector<1x128xf32>
    %cst_38 = arith.constant dense<0.000000e+00> : vector<128xf32>
    %101 = vector.multi_reduction <add>, %98, %cst_38 [0] : vector<32x128xf32> to vector<128xf32>
    %102 = vector.shape_cast %101 : vector<128xf32> to vector<1x128xf32>
    %cst_39 = arith.constant dense<0.000000e+00> : vector<1x128xf32>
    %103 = tpu.matmul %102, %74, %cst_39 {dimension_numbers = #tpu.dot_dimension_numbers<[1], [0], [0], [1], [0, 0, 1, 1], [], []>} : vector<1x128xf32>, vector<128x128xf32>, vector<1x128xf32> -> vector<1x128xf32>
    %cst_40 = arith.constant 0.001953125 : f32
    %104 = vector.broadcast %cst_40 : f32 to vector<1x128xf32>
    %105 = arith.mulf %103, %104 : vector<1x128xf32>
    %106 = vector.broadcast %105 : vector<1x128xf32> to vector<32x128xf32>
    %107 = arith.subf %98, %106 : vector<32x128xf32>
    %108 = arith.mulf %107, %107 : vector<32x128xf32>
    %cst_41 = arith.constant dense<0.000000e+00> : vector<128xf32>
    %109 = vector.multi_reduction <add>, %108, %cst_41 [0] : vector<32x128xf32> to vector<128xf32>
    %110 = vector.shape_cast %109 : vector<128xf32> to vector<1x128xf32>
    %cst_42 = arith.constant dense<0.000000e+00> : vector<1x128xf32>
    %111 = tpu.matmul %110, %74, %cst_42 {dimension_numbers = #tpu.dot_dimension_numbers<[1], [0], [0], [1], [0, 0, 1, 1], [], []>} : vector<1x128xf32>, vector<128x128xf32>, vector<1x128xf32> -> vector<1x128xf32>
    %cst_43 = arith.constant 0.001953125 : f32
    %112 = vector.broadcast %cst_43 : f32 to vector<1x128xf32>
    %113 = arith.mulf %111, %112 : vector<1x128xf32>
    %cst_44 = arith.constant 9.99999974E-6 : f32
    %114 = vector.broadcast %cst_44 : f32 to vector<1x128xf32>
    %115 = arith.addf %113, %114 : vector<1x128xf32>
    %116 = math.rsqrt %115 : vector<1x128xf32>
    %117 = arith.mulf %99, %116 : vector<1x128xf32>
    %118 = vector.broadcast %117 : vector<1x128xf32> to vector<32x128xf32>
    %119 = arith.mulf %107, %118 : vector<32x128xf32>
    %120 = vector.broadcast %100 : vector<1x128xf32> to vector<32x128xf32>
    %121 = arith.addf %119, %120 : vector<32x128xf32>
    %cst_45 = arith.constant 0.000000e+00 : f32
    %122 = vector.broadcast %cst_45 : f32 to vector<32x128xf32>
    %123 = arith.cmpf ogt, %121, %122 : vector<32x128xf32>
    %cst_46 = arith.constant 0.00999999977 : f32
    %124 = vector.broadcast %cst_46 : f32 to vector<32x128xf32>
    %125 = arith.mulf %124, %121 : vector<32x128xf32>
    %126 = arith.select %123, %121, %125 : vector<32x128xi1>, vector<32x128xf32>
    %c1_i32_47 = arith.constant 1 : i32
    %127 = tpu.dynamic_rotate %126 by %c1_i32_47 dim 0 : vector<32x128xf32>, i32 -> vector<32x128xf32>
    %cst_48 = arith.constant 0.000000e+00 : f32
    %128 = vector.shape_cast %19 : vector<32x1xi1> to vector<32x1xi1>
    %129 = vector.broadcast %128 : vector<32x1xi1> to vector<32x128xi1>
    %130 = vector.broadcast %cst_48 : f32 to vector<32x128xf32>
    %131 = arith.select %129, %127, %130 : vector<32x128xi1>, vector<32x128xf32>
    %c31_i32_49 = arith.constant 31 : i32
    %132 = tpu.dynamic_rotate %126 by %c31_i32_49 dim 0 : vector<32x128xf32>, i32 -> vector<32x128xf32>
    %cst_50 = arith.constant 0.000000e+00 : f32
    %133 = vector.shape_cast %37 : vector<32x1xi1> to vector<32x1xi1>
    %134 = vector.broadcast %133 : vector<32x1xi1> to vector<32x128xi1>
    %135 = vector.broadcast %cst_50 : f32 to vector<32x128xf32>
    %136 = arith.select %134, %132, %135 : vector<32x128xi1>, vector<32x128xf32>
    %137 = arith.truncf %126 : vector<32x128xf32> to vector<32x128xbf16>
    %c1_51 = arith.constant 1 : index
    %c0_52 = arith.constant 0 : index
    %c0_53 = arith.constant 0 : index
    %138 = vector.load %arg3[%c1_51, %c0_52, %c0_53] : memref<3x128x128xbf16, #tpu.memory_space<vmem>>, vector<1x128x128xbf16>
    %139 = vector.shape_cast %138 : vector<1x128x128xbf16> to vector<128x128xbf16>
    %cst_54 = arith.constant dense<0.000000e+00> : vector<32x128xf32>
    %140 = tpu.matmul %137, %139, %cst_54 {dimension_numbers = #tpu.dot_dimension_numbers<[1], [0], [0], [1], [0, 0, 1, 1], [], []>} : vector<32x128xbf16>, vector<128x128xbf16>, vector<32x128xf32> -> vector<32x128xf32>
    %141 = arith.truncf %131 : vector<32x128xf32> to vector<32x128xbf16>
    %c0_55 = arith.constant 0 : index
    %c0_56 = arith.constant 0 : index
    %c0_57 = arith.constant 0 : index
    %142 = vector.load %arg3[%c0_55, %c0_56, %c0_57] : memref<3x128x128xbf16, #tpu.memory_space<vmem>>, vector<1x128x128xbf16>
    %143 = vector.shape_cast %142 : vector<1x128x128xbf16> to vector<128x128xbf16>
    %cst_58 = arith.constant dense<0.000000e+00> : vector<32x128xf32>
    %144 = tpu.matmul %141, %143, %cst_58 {dimension_numbers = #tpu.dot_dimension_numbers<[1], [0], [0], [1], [0, 0, 1, 1], [], []>} : vector<32x128xbf16>, vector<128x128xbf16>, vector<32x128xf32> -> vector<32x128xf32>
    %145 = arith.addf %140, %144 : vector<32x128xf32>
    %146 = arith.truncf %136 : vector<32x128xf32> to vector<32x128xbf16>
    %c2_59 = arith.constant 2 : index
    %c0_60 = arith.constant 0 : index
    %c0_61 = arith.constant 0 : index
    %147 = vector.load %arg3[%c2_59, %c0_60, %c0_61] : memref<3x128x128xbf16, #tpu.memory_space<vmem>>, vector<1x128x128xbf16>
    %148 = vector.shape_cast %147 : vector<1x128x128xbf16> to vector<128x128xbf16>
    %cst_62 = arith.constant dense<0.000000e+00> : vector<32x128xf32>
    %149 = tpu.matmul %146, %148, %cst_62 {dimension_numbers = #tpu.dot_dimension_numbers<[1], [0], [0], [1], [0, 0, 1, 1], [], []>} : vector<32x128xbf16>, vector<128x128xbf16>, vector<32x128xf32> -> vector<32x128xf32>
    %150 = arith.addf %145, %149 : vector<32x128xf32>
    %c0_63 = arith.constant 0 : index
    %c0_64 = arith.constant 0 : index
    %151 = vector.load %arg6[%c0_63, %c0_64] : memref<1x128xf32, #tpu.memory_space<vmem>>, vector<1x128xf32>
    %c0_65 = arith.constant 0 : index
    %c0_66 = arith.constant 0 : index
    %152 = vector.load %arg7[%c0_65, %c0_66] : memref<1x128xf32, #tpu.memory_space<vmem>>, vector<1x128xf32>
    %cst_67 = arith.constant dense<0.000000e+00> : vector<128xf32>
    %153 = vector.multi_reduction <add>, %150, %cst_67 [0] : vector<32x128xf32> to vector<128xf32>
    %154 = vector.shape_cast %153 : vector<128xf32> to vector<1x128xf32>
    %cst_68 = arith.constant dense<0.000000e+00> : vector<1x128xf32>
    %155 = tpu.matmul %154, %74, %cst_68 {dimension_numbers = #tpu.dot_dimension_numbers<[1], [0], [0], [1], [0, 0, 1, 1], [], []>} : vector<1x128xf32>, vector<128x128xf32>, vector<1x128xf32> -> vector<1x128xf32>
    %cst_69 = arith.constant 0.001953125 : f32
    %156 = vector.broadcast %cst_69 : f32 to vector<1x128xf32>
    %157 = arith.mulf %155, %156 : vector<1x128xf32>
    %158 = vector.broadcast %157 : vector<1x128xf32> to vector<32x128xf32>
    %159 = arith.subf %150, %158 : vector<32x128xf32>
    %160 = arith.mulf %159, %159 : vector<32x128xf32>
    %cst_70 = arith.constant dense<0.000000e+00> : vector<128xf32>
    %161 = vector.multi_reduction <add>, %160, %cst_70 [0] : vector<32x128xf32> to vector<128xf32>
    %162 = vector.shape_cast %161 : vector<128xf32> to vector<1x128xf32>
    %cst_71 = arith.constant dense<0.000000e+00> : vector<1x128xf32>
    %163 = tpu.matmul %162, %74, %cst_71 {dimension_numbers = #tpu.dot_dimension_numbers<[1], [0], [0], [1], [0, 0, 1, 1], [], []>} : vector<1x128xf32>, vector<128x128xf32>, vector<1x128xf32> -> vector<1x128xf32>
    %cst_72 = arith.constant 0.001953125 : f32
    %164 = vector.broadcast %cst_72 : f32 to vector<1x128xf32>
    %165 = arith.mulf %163, %164 : vector<1x128xf32>
    %cst_73 = arith.constant 9.99999974E-6 : f32
    %166 = vector.broadcast %cst_73 : f32 to vector<1x128xf32>
    %167 = arith.addf %165, %166 : vector<1x128xf32>
    %168 = math.rsqrt %167 : vector<1x128xf32>
    %169 = arith.mulf %151, %168 : vector<1x128xf32>
    %170 = vector.broadcast %169 : vector<1x128xf32> to vector<32x128xf32>
    %171 = arith.mulf %159, %170 : vector<32x128xf32>
    %172 = vector.broadcast %152 : vector<1x128xf32> to vector<32x128xf32>
    %173 = arith.addf %171, %172 : vector<32x128xf32>
    %cst_74 = arith.constant 0.000000e+00 : f32
    %174 = vector.broadcast %cst_74 : f32 to vector<32x128xf32>
    %175 = arith.cmpf ogt, %173, %174 : vector<32x128xf32>
    %cst_75 = arith.constant 0.00999999977 : f32
    %176 = vector.broadcast %cst_75 : f32 to vector<32x128xf32>
    %177 = arith.mulf %176, %173 : vector<32x128xf32>
    %178 = arith.select %175, %173, %177 : vector<32x128xi1>, vector<32x128xf32>
    %179 = arith.addf %178, %0 : vector<32x128xf32>
    %c0_76 = arith.constant 0 : index
    %c0_77 = arith.constant 0 : index
    %180 = vector.load %arg8[%c0_76, %c0_77] : memref<32x128xf32, #tpu.memory_space<vmem>>, vector<32x128xf32>
    tpu.vector_store %arg8[%c0_76, %c0_77], %179 {strides = array<i32>} : memref<32x128xf32, #tpu.memory_space<vmem>>, vector<32x128xf32>,
    return
  }
  func.func @transform_0(%arg0: i32) -> (i32, i32) {
    %c0_i32 = arith.constant 0 : i32
    %c0_i32_0 = arith.constant 0 : i32
    %c0_i32_1 = arith.constant 0 : i32
    return %c0_i32, %c0_i32_0 : i32, i32
  }
  func.func @transform_1(%arg0: i32) -> (i32, i32, i32) {
    %c0_i32 = arith.constant 0 : i32
    %c0_i32_0 = arith.constant 0 : i32
    %c0_i32_1 = arith.constant 0 : i32
    %c0_i32_2 = arith.constant 0 : i32
    return %c0_i32, %c0_i32_0, %c0_i32_1 : i32, i32, i32
  }
  func.func @transform_2(%arg0: i32) -> (i32, i32, i32) {
    %c0_i32 = arith.constant 0 : i32
    %c0_i32_0 = arith.constant 0 : i32
    %c0_i32_1 = arith.constant 0 : i32
    %c0_i32_2 = arith.constant 0 : i32
    return %c0_i32, %c0_i32_0, %c0_i32_1 : i32, i32, i32
  }
  func.func @transform_3(%arg0: i32) -> (i32, i32) {
    %c0_i32 = arith.constant 0 : i32
    %c0_i32_0 = arith.constant 0 : i32
    %c0_i32_1 = arith.constant 0 : i32
    return %c0_i32, %c0_i32_0 : i32, i32
  }
  func.func @transform_4(%arg0: i32) -> (i32, i32) {
    %c0_i32 = arith.constant 0 : i32
    %c0_i32_0 = arith.constant 0 : i32
    %c0_i32_1 = arith.constant 0 : i32
    return %c0_i32, %c0_i32_0 : i32, i32
  }
  func.func @transform_5(%arg0: i32) -> (i32, i32) {
    %c0_i32 = arith.constant 0 : i32
    %c0_i32_0 = arith.constant 0 : i32
    %c0_i32_1 = arith.constant 0 : i32
    return %c0_i32, %c0_i32_0 : i32, i32
  }
  func.func @transform_6(%arg0: i32) -> (i32, i32) {
    %c0_i32 = arith.constant 0 : i32
    %c0_i32_0 = arith.constant 0 : i32
    %c0_i32_1 = arith.constant 0 : i32
    return %c0_i32, %c0_i32_0 : i32, i32
  }
  func.func @transform_7(%arg0: i32) -> (i32, i32) {
    %c0_i32 = arith.constant 0 : i32
    %c0_i32_0 = arith.constant 0 : i32
    %c0_i32_1 = arith.constant 0 : i32
    return %c0_i32, %c0_i32_0 : i32, i32
  }
}

</mosaic_0001>

<bundles_post_ra>
// kernel: tile.23
= control target key start
LH: loop header
LB: loop body
LE: loop exit
PB: predicated region body
PF: predicated region fallthrough
CT: control target
= control target key end

     0   :  { %s28_s0 = inlined_call_operand.vmem [shape: f32[8], index: 0, kind: input, shape index: {}]   ;;  %s29_s1 = inlined_call_operand.vmem [shape: f32[16,8], index: 1, kind: output, shape index: {}]  }
   0x1   :  { %v4_v0 = vld [vmem:[%s28_s0] ss:$0 sm:$0xff] }
   0x2   :  { %5 = vst [vmem:[%s29_s1] sm:$0xff] %v4_v0  ;;  %8 = vst [vmem:[%s29_s1 + $0x8] sm:$0xff] %v4_v0 }

// kernel: tile.24
= control target key start
LH: loop header
LB: loop body
LE: loop exit
PB: predicated region body
PF: predicated region fallthrough
CT: control target
= control target key end

     0   :  { %s133_s10 = smov 120   ;;  %s134_s11 = smov 104   ;;  %vm3_vm0 = vcmask 64512   ;;  %vm9_vm1 = vcmask 1048512   ;;  %vm15_vm2 = vcmask 982912   ;;  %vm21_vm3 = vcmask 917312   ;;  %s209_s0 = inlined_call_operand.vmem [shape: f32[16,8], index: 0, kind: input, shape index: {}]   ;;  %s210_s1 = inlined_call_operand.vmem [shape: f32[1,128], index: 1, kind: output, shape index: {}]  }
   0x1   :  { %v103_v0 = vld [vmem:[%s209_s0 + $0xf] sm:$0x1]   ;;  %v105_v1 = vld [vmem:[%s209_s0 + $0xd] sm:$0x1]   ;;  %v104_v2 = vld [vmem:[%s209_s0 + $0xe] sm:$0x1]  }
   0x2   :  { %7 = vrot.lane.b32.xlu0 %v103_v0, %s133_s10  ;;  %19 = vrot.lane.b32.xlu1 %v105_v1, %s134_s11  ;;  %v106_v3 = vld [vmem:[%s209_s0 + $0xc] sm:$0x1]   ;;  %s135_s16 = smov 112   ;;  %s136_s17 = smov 96   ;;  %v107_v4 = vld [vmem:[%s209_s0 + $0xb] sm:$0x1]  }
   0x3   :  { %v108_v5 = vld [vmem:[%s209_s0 + $0xa] sm:$0x1]   ;;  %v2_v6 = vld [vmem:[%s209_s0] sm:$0x1]   ;;  %s137_s24 = smov 88   ;;  %s138_s25 = smov 80  }
   0x4   :  { %4 = vst.msk [vmem:[#allocation0] sm:$0x1] %vm3_vm0, %v2_v6   ;;  %v109_v7 = vld [vmem:[%s209_s0 + $0x9] sm:$0x1]   ;;  %v110_v8 = vld [vmem:[%s209_s0 + $0x8] sm:$0x1]  }
   0x5   :  { %s139_s30 = smov 72   ;;  %s140_s2 = smov 64   ;;  %v111_v9 = vld [vmem:[%s209_s0 + $0x7] sm:$0x1]   ;;  %v112_v10 = vld [vmem:[%s209_s0 + $0x6] sm:$0x1]  }
   0x6   :  { %13 = vrot.lane.b32.xlu0 %v104_v2, %s135_s16  ;;  %25 = vrot.lane.b32.xlu1 %v106_v3, %s136_s17  ;;  %s141_s7 = smov 56   ;;  %s142_s8 = smov 48   ;;  %v113_v11 = vld [vmem:[%s209_s0 + $0x5] sm:$0x1]   ;;  %v114_v12 = vld [vmem:[%s209_s0 + $0x4] sm:$0x1]  }
   0x7   :  { %s143_s13 = smov 40   ;;  %s144_s14 = smov 32   ;;  %v115_v13 = vld [vmem:[%s209_s0 + $0x3] sm:$0x1]   ;;  %v116_v14 = vld [vmem:[%s209_s0 + $0x2] sm:$0x1]  }
   0x8   :  { %s145_s19 = smov 24   ;;  %s146_s20 = smov 16   ;;  %v117_v15 = vld [vmem:[%s209_s0 + $0x1] sm:$0x1]   ;;  %vm27_vm4 = vcmask 851712   ;;  %vm33_vm5 = vcmask 786112  }
   0x9   :  { %s147_s0 = smov 8   ;;  %vm39_vm6 = vcmask 720512   ;;  %vm45_vm7 = vcmask 654912   ;;  %vm51_vm8 = vcmask 589312   ;;  %vm57_vm9 = vcmask 523712  }
   0xa   :  { %31 = vrot.lane.b32.xlu0 %v107_v4, %s137_s24  ;;  %37 = vrot.lane.b32.xlu1 %v108_v5, %s138_s25  ;;  %vm63_vm10 = vcmask 458112   ;;  %vm69_vm11 = vcmask 392512   ;;  %vm75_vm12 = vcmask 326912   ;;  %vm81_vm13 = vcmask 261312  }
   0xb   :  { %vm87_vm14 = vcmask 195712   ;;  %vm93_vm15 = vcmask 130112  }
   0xe   :  { %43 = vrot.lane.b32.xlu0 %v109_v7, %s139_s30  ;;  %49 = vrot.lane.b32.xlu1 %v110_v8, %s140_s2 }
  0x12   :  { %55 = vrot.lane.b32.xlu0 %v111_v9, %s141_s7  ;;  %61 = vrot.lane.b32.xlu1 %v112_v10, %s142_s8 }
  0x16   :  { %67 = vrot.lane.b32.xlu0 %v113_v11, %s143_s13  ;;  %73 = vrot.lane.b32.xlu1 %v114_v12, %s144_s14 }
  0x1a   :  { %79 = vrot.lane.b32.xlu0 %v115_v13, %s145_s19  ;;  %85 = vrot.lane.b32.xlu1 %v116_v14, %s146_s20 }
  0x1e   :  { %91 = vrot.lane.b32.xlu0 %v117_v15, %s147_s0 }
  0x74   :  { %v8_v16 = vpop.permute.xlu0 %7   ;;  %v20_v17 = vpop.permute.xlu1 %19  }
  0x75   :  { %10 = vst.msk [vmem:[#allocation0] sm:$0x1] %vm9_vm1, %v8_v16  }
  0x78   :  { %v14_v18 = vpop.permute.xlu0 %13   ;;  %v26_v19 = vpop.permute.xlu1 %25  }
  0x79   :  { %16 = vst.msk [vmem:[#allocation0] sm:$0x1] %vm15_vm2, %v14_v18  }
  0x7a   :  { %22 = vst.msk [vmem:[#allocation0] sm:$0x1] %vm21_vm3, %v20_v17  }
  0x7b   :  { %28 = vst.msk [vmem:[#allocation0] sm:$0x1] %vm27_vm4, %v26_v19  }
  0x7c   :  { %v32_v20 = vpop.permute.xlu0 %31   ;;  %v38_v21 = vpop.permute.xlu1 %37  }
  0x7d   :  { %34 = vst.msk [vmem:[#allocation0] sm:$0x1] %vm33_vm5, %v32_v20  }
  0x7e   :  { %40 = vst.msk [vmem:[#allocation0] sm:$0x1] %vm39_vm6, %v38_v21  }
  0x80   :  { %v44_v22 = vpop.permute.xlu0 %43   ;;  %v50_v23 = vpop.permute.xlu1 %49  }
  0x81   :  { %46 = vst.msk [vmem:[#allocation0] sm:$0x1] %vm45_vm7, %v44_v22  }
  0x82   :  { %52 = vst.msk [vmem:[#allocation0] sm:$0x1] %vm51_vm8, %v50_v23  }
  0x84   :  { %v56_v24 = vpop.permute.xlu0 %55   ;;  %v62_v25 = vpop.permute.xlu1 %61  }
  0x85   :  { %58 = vst.msk [vmem:[#allocation0] sm:$0x1] %vm57_vm9, %v56_v24  }
  0x86   :  { %64 = vst.msk [vmem:[#allocation0] sm:$0x1] %vm63_vm10, %v62_v25  }
  0x88   :  { %v68_v26 = vpop.permute.xlu0 %67   ;;  %v74_v27 = vpop.permute.xlu1 %73  }
  0x89   :  { %70 = vst.msk [vmem:[#allocation0] sm:$0x1] %vm69_vm11, %v68_v26  }
  0x8a   :  { %76 = vst.msk [vmem:[#allocation0] sm:$0x1] %vm75_vm12, %v74_v27  }
  0x8c   :  { %v80_v28 = vpop.permute.xlu0 %79   ;;  %v86_v29 = vpop.permute.xlu1 %85  }
  0x8d   :  { %82 = vst.msk [vmem:[#allocation0] sm:$0x1] %vm81_vm13, %v80_v28  }
  0x8e   :  { %88 = vst.msk [vmem:[#allocation0] sm:$0x1] %vm87_vm14, %v86_v29  }
  0x90   :  { %v92_v30 = vpop.permute.xlu0 %91  }
  0x91   :  { %94 = vst.msk [vmem:[#allocation0] sm:$0x1] %vm93_vm15, %v92_v30  }
  0x98   :  { %v99_v31 = vld [vmem:[#allocation0] sm:$0x1] }
  0x99   :  { %102 = vst [vmem:[%s210_s1] sm:$0x1] %v99_v31 }

// kernel: block_forward.1
= control target key start
LH: loop header
LB: loop body
LE: loop exit
PB: predicated region body
PF: predicated region fallthrough
CT: control target
= control target key end

     0   :  { %v31_v5 = vlaneseq  ;;  %vm2222_vm2 = vmmov 1   ;;  %v3011_v62 = vmov 0  ;;  %s2972_s1 = inlined_call_operand.vmem [shape: bf16[3,128,128], index: 1, kind: input, shape index: {}]   ;;  %s2973_s0 = inlined_call_operand.vmem [shape: f32[32,128], index: 0, kind: input, shape index: {}]   ;;  %s2974_s2 = inlined_call_operand.vmem [shape: bf16[3,128,128], index: 2, kind: input, shape index: {}]   ;;  %s2975_s3 = inlined_call_operand.vmem [shape: f32[1,128], index: 3, kind: input, shape index: {}]   ;;  %s2976_s4 = inlined_call_operand.vmem [shape: f32[1,128], index: 4, kind: input, shape index: {}]   ;;  %s2977_s5 = inlined_call_operand.vmem [shape: f32[1,128], index: 5, kind: input, shape index: {}]   ;;  %s2978_s6 = inlined_call_operand.vmem [shape: f32[1,128], index: 6, kind: input, shape index: {}]   ;;  %s2979_s7 = inlined_call_operand.vmem [shape: f32[32,128], index: 7, kind: output, shape index: {}]  }
   0x1   :  { %v2166_v0 = vld [vmem:[%s2972_s1 + $0x38] sm:$0xff]   ;;  %v2168_v2 = vld [vmem:[%s2972_s1 + $0x30] sm:$0xff]   ;;  %v2170_v4 = vld [vmem:[%s2972_s1 + $0x28] sm:$0xff]  }
   0x2   :  { %v2167_v1 = vld [vmem:[%s2972_s1 + $0x78] sm:$0xff]   ;;  %1902 = vmatprep.subr.bf16.mxu0 %v2166_v0  ;;  %v2169_v3 = vld [vmem:[%s2972_s1 + $0x70] sm:$0xff]   ;;  %v2171_v6 = vld [vmem:[%s2972_s1 + $0x68] sm:$0xff]   ;;  %v2288_v8 = vshrl.u32 %v31_v5, 7 }
   0x3   :  { %1922 = vmatprep.subr.bf16.mxu1 %v2167_v1  ;;  %1903 = vmatpush3.bf16.msra.mxu0 %v2166_v0  ;;  %v2172_v7 = vld [vmem:[%s2972_s1 + $0x20] sm:$0xff]   ;;  %v2174_v10 = vld [vmem:[%s2972_s1 + $0x18] sm:$0xff]   ;;  %v2176_v13 = vld [vmem:[%s2972_s1 + $0x10] sm:$0xff]   ;;  %v105_v0 = vand.u32 127, %v31_v5 }
   0x4   :  { %1923 = vmatpush3.bf16.msra.mxu1 %v2167_v1  ;;  %1904 = vmatprep.subr.bf16.mxu0 %v2168_v2  ;;  %v2173_v9 = vld [vmem:[%s2972_s1 + $0x60] sm:$0xff]   ;;  %v40_v11 = vand.u32 15, %v2288_v8  ;;  %v2175_v12 = vld [vmem:[%s2972_s1 + $0x58] sm:$0xff]   ;;  %v28_v15 = vld [vmem:[%s2973_s0 + $0x8] sm:$0xff]  ;;  %vm2981_vm1 = vcmp.lt.s32.totalorder %v2288_v8, 1  ;;  %v2327_v23 = vadd.s32 16, %v2288_v8 }
   0x5   :  { %1924 = vmatprep.subr.bf16.mxu1 %v2169_v3  ;;  %v2306_v14 = vld [vmem:[%s2973_s0] sm:$0xff]  ;;  %v2314_v16 = vld [vmem:[%s2973_s0 + $0x18] sm:$0xff]  ;;  %v2177_v17 = vld [vmem:[%s2972_s1 + $0x50] sm:$0xff]   ;;  %v359_v19 = vrot.slane %v28_v15, 7  ;;  %v2350_v31 = vadd.s32 8, %v2288_v8  ;;  %v380_v36 = vrot.slane %v28_v15, 1 }
   0x6   :  { %vm84_vm0 = vcmp.ne.s32.totalorder %v40_v11, 0  ;;  %v358_v18 = vrot.slane %v2306_v14, 7  ;;  %v361_v20 = vrot.slane %v2314_v16, 7  ;;  %v2178_v21 = vld [vmem:[%s2972_s1 + $0x8] sm:$0xff]   ;;  %v400_v22 = vpack.c.bf16 %v28_v15, %v2306_v14  ;;  %v2341_v28 = vld [vmem:[%s2973_s0 + $0x10] sm:$0xff]  ;;  %v2180_v32 = vld [vmem:[%s2972_s1] sm:$0xff]  }
   0x7   :  { %1905 = vmatpush3.bf16.msra.mxu0 %v2168_v2  ;;  %vm2334_vm3 = vmpackc.low %vm2222_vm2, %vm84_vm0  ;;  %v2179_v29 = vld [vmem:[%s2972_s1 + $0x48] sm:$0xff]   ;;  %v54_v30 = vand.u32 15, %v2327_v23  ;;  %v360_v33 = vrot.slane %v2341_v28, 7  ;;  %v2181_v34 = vld [vmem:[%s2972_s1 + $0x40] sm:$0xff]   ;;  %v379_v35 = vrot.slane %v2306_v14, 1  ;;  %v381_v37 = vrot.slane %v2341_v28, 1 }
   0x8   :  { %1925 = vmatpush3.bf16.msra.mxu1 %v2169_v3  ;;  %1906 = vmatprep.subr.bf16.mxu0 %v2170_v4  ;;  %v365_v24 = vsel %vm2981_vm1, %v358_v18, %v359_v19  ;;  %v366_v25 = vsel %vm2981_vm1, %v361_v20, %v358_v18  ;;  %v47_v38 = vand.u32 15, %v2350_v31  ;;  %vm2980_vm4 = vcmp.lt.s32.totalorder %v2288_v8, 7  ;;  %v2182_v41 = vld [vmem:[%s2972_s1 + $0xb8] sm:$0xff]   ;;  %v2183_v47 = vld [vmem:[%s2972_s1 + $0xb0] sm:$0xff]   ;;  %v2184_v50 = vld [vmem:[%s2972_s1 + $0xa8] sm:$0xff]  }
   0x9   :  { %1926 = vmatprep.subr.bf16.mxu1 %v2171_v6  ;;  %v1597_v27 = vpack.c.bf16 %v365_v24, %v366_v25  ;;  %1938 = vmatprep.mubr.bf16.mxu1 %v400_v22  ;;  %v363_v39 = vsel %vm2981_vm1, %v360_v33, %v361_v20  ;;  %v364_v40 = vsel %vm2981_vm1, %v359_v19, %v360_v33  ;;  %vm86_vm5 = vcmp.ne.s32.totalorder %v54_v30, 0  ;;  %v2185_v51 = vld [vmem:[%s2972_s1 + $0xa0] sm:$0xff]   ;;  %v2186_v52 = vld [vmem:[%s2972_s1 + $0x98] sm:$0xff]   ;;  %v2187_v53 = vld [vmem:[%s2972_s1 + $0x90] sm:$0xff]  }
   0xa   :  { %v385_v42 = vsel %vm2980_vm4, %v380_v36, %v381_v37  ;;  %v386_v43 = vsel %vm2980_vm4, %v379_v35, %v380_v36  ;;  %v1600_v44 = vpack.c.bf16 %v363_v39, %v364_v40  ;;  %vm89_vm6 = vcmp.ne.s32.totalorder %v47_v38, 15  ;;  %vm2375_vm7 = vmpackc.low %vm2222_vm2, %vm86_vm5  ;;  %v2188_v54 = vld [vmem:[%s2972_s1 + $0x88] sm:$0xff]   ;;  %v2189_v57 = vld [vmem:[%s2972_s1 + $0x80] sm:$0xff]  }
   0xb   :  { %1907 = vmatpush3.bf16.msra.mxu0 %v2170_v4  ;;  %1918 = vmatprep.mubr.msk.bf16.mxu0 %vm2334_vm3, %v1597_v27  ;;  %v401_v46 = vpack.c.bf16 %v2314_v16, %v2341_v28  ;;  %v1635_v48 = vpack.c.bf16 %v385_v42, %v386_v43  ;;  %vm2385_vm8 = vmpackc.low %vm89_vm6, %vm2222_vm2  ;;  %v2409_v55 = vadd.s32 24, %v2288_v8  ;;  %v382_v56 = vrot.slane %v2314_v16, 1  ;;  %v2208_v26 = vld [vmem:[%s2974_s2 + $0xa8] sm:$0xff]   ;;  %v2209_v45 = vld [vmem:[%s2974_s2 + $0xa0] sm:$0xff]  }
   0xc   :  { %1927 = vmatpush3.bf16.msra.mxu1 %v2171_v6  ;;  %1908 = vmatprep.subr.bf16.mxu0 %v2172_v7  ;;  %v103_v63 = vadd.s32 120, %v2288_v8  ;;  %v2223_v1 = vmov 0.0   ;;  %v102_v2 = vadd.s32 112, %v2288_v8  ;;  %v2432_v4 = vand.u32 7, %v105_v0  ;;  %v2210_v49 = vld [vmem:[%s2974_s2 + $0x98] sm:$0xff]  }
   0xd   :  { %1928 = vmatprep.subr.bf16.mxu1 %v2173_v9  ;;  %v61_v58 = vand.u32 15, %v2409_v55  ;;  %v384_v59 = vsel %vm2980_vm4, %v381_v37, %v382_v56  ;;  %v387_v60 = vsel %vm2980_vm4, %v382_v56, %v379_v35  ;;  %v99_v15 = vadd.s32 88, %v2288_v8 }
   0xe   :  { %v1638_v61 = vpack.c.bf16 %v387_v60, %v384_v59  ;;  %v215_v3 = vand.u32 7, %v103_v63  ;;  %v208_v6 = vand.u32 7, %v102_v2  ;;  %v98_v18 = vadd.s32 80, %v2288_v8 }
   0xf   :  { %1909 = vmatpush3.bf16.msra.mxu0 %v2172_v7  ;;  %vm91_vm9 = vcmp.ne.s32.totalorder %v61_v58, 15  ;;  %v96_v25 = vadd.s32 64, %v2288_v8  ;;  %v3025_v27 = vmov 0  ;;  %v3027_v30 = vmov 0 }
  0x10   :  { %1929 = vmatpush3.bf16.msra.mxu1 %v2173_v9  ;;  %1910 = vmatprep.subr.bf16.mxu0 %v2174_v10  ;;  %vm2421_vm10 = vmpackc.low %vm91_vm9, %vm2222_vm2  ;;  %vm2435_vm11 = vcmp.eq.s32.totalorder %v215_v3, %v2432_v4  ;;  %v2224_v9 = vmov 1.0   ;;  %vm2443_vm12 = vcmp.eq.s32.totalorder %v208_v6, %v2432_v4  ;;  %v180_v20 = vand.u32 7, %v98_v18 }
  0x11   :  { %1930 = vmatprep.subr.bf16.mxu1 %v2175_v12  ;;  %v3012_v62 = vsel %vm2421_vm10, 4294967295, %v3011_v62  ;;  %v166_v28 = vand.u32 7, %v96_v25  ;;  %v94_v33 = vadd.s32 48, %v2288_v8  ;;  %v93_v36 = vadd.s32 40, %v2288_v8 }
  0x12   :  { %vm2504_vm0 = vcmp.eq.s32.totalorder %v180_v20, %v2432_v4  ;;  %v3031_v37 = vmov 0  ;;  %v92_v39 = vadd.s32 32, %v2288_v8  ;;  %v3033_v40 = vmov 0 }
  0x13   :  { %1911 = vmatpush3.bf16.msra.mxu0 %v2174_v10  ;;  %v101_v10 = vadd.s32 104, %v2288_v8  ;;  %vm2532_vm5 = vcmp.eq.s32.totalorder %v166_v28, %v2432_v4  ;;  %v152_v35 = vand.u32 7, %v94_v33  ;;  %v145_v38 = vand.u32 7, %v93_v36 }
  0x14   :  { %1931 = vmatpush3.bf16.msra.mxu1 %v2175_v12  ;;  %1912 = vmatprep.subr.bf16.mxu0 %v2176_v13  ;;  %v100_v12 = vadd.s32 96, %v2288_v8  ;;  %v3028_v30 = vsel %vm2532_vm5, 4294967295, %v3027_v30  ;;  %v3035_v42 = vmov 0  ;;  %v131_v43 = vand.u32 7, %v2409_v55 }
  0x15   :  { %1932 = vmatprep.subr.bf16.mxu1 %v2177_v17  ;;  %v201_v11 = vand.u32 7, %v101_v10  ;;  %vm2560_vm9 = vcmp.eq.s32.totalorder %v152_v35, %v2432_v4  ;;  %vm2574_vm4 = vcmp.eq.s32.totalorder %v145_v38, %v2432_v4 }
  0x16   :  { %v194_v14 = vand.u32 7, %v100_v12  ;;  %v3032_v37 = vsel %vm2560_vm9, 4294967295, %v3031_v37  ;;  %v3034_v40 = vsel %vm2574_vm4, 4294967295, %v3033_v40 }
  0x17   :  { %1913 = vmatpush3.bf16.msra.mxu0 %v2176_v13  ;;  %vm2463_vm13 = vcmp.eq.s32.totalorder %v201_v11, %v2432_v4 }
  0x18   :  { %1933 = vmatpush3.bf16.msra.mxu1 %v2177_v17  ;;  %1914 = vmatprep.subr.bf16.mxu0 %v2178_v21  ;;  %vm2476_vm14 = vcmp.eq.s32.totalorder %v194_v14, %v2432_v4  ;;  %v187_v17 = vand.u32 7, %v99_v15 }
  0x19   :  { %1934 = vmatprep.subr.bf16.mxu1 %v2179_v29 }
  0x1a   :  { %vm2490_vm15 = vcmp.eq.s32.totalorder %v187_v17, %v2432_v4 }
  0x1b   :  { %1915 = vmatpush3.bf16.msra.mxu0 %v2178_v21  ;;  %v97_v21 = vadd.s32 72, %v2288_v8 }
  0x1c   :  { %1935 = vmatpush3.bf16.msra.mxu1 %v2179_v29  ;;  %1916 = vmatprep.subr.bf16.mxu0 %v2180_v32  ;;  %v95_v29 = vadd.s32 56, %v2288_v8 }
  0x1d   :  { %1936 = vmatprep.subr.bf16.mxu1 %v2181_v34  ;;  %v173_v24 = vand.u32 7, %v97_v21 }
  0x1f   :  { %1917 = vmatpush3.bf16.msra.mxu0 %v2180_v32  ;;  %vm2518_vm2 = vcmp.eq.s32.totalorder %v173_v24, %v2432_v4  ;;  %v159_v32 = vand.u32 7, %v95_v29  ;;  %v2659_v29 = vsub.s32 0, %v2288_v8 }
  0x20   :  { %1937 = vmatpush3.bf16.msra.mxu1 %v2181_v34  ;;  %1942 = vmatprep.subr.bf16.mxu0 %v2182_v41  ;;  %v3026_v27 = vsel %vm2518_vm2, 4294967295, %v3025_v27  ;;  %v3029_v34 = vmov 0 }
  0x21   :  { %1962 = vmatprep.subr.mxu1 %v2223_v1  ;;  %vm2546_vm6 = vcmp.eq.s32.totalorder %v159_v32, %v2432_v4 }
  0x22   :  { %1919 = vmatmul.mubr.msk.bf16.vlgmr.msra.gmra.mxu0 %vm2375_vm7, %v1600_v44  ;;  %v3030_v34 = vsel %vm2546_vm6, 4294967295, %v3029_v34  ;;  %v124_v44 = vand.u32 7, %v2327_v23  ;;  %v3039_v23 = vmov 0 }
  0x23   :  { %1939 = vmatmul.mubr.bf16.vlgmr.msra.gmra.mxu1 %v401_v46  ;;  %1943 = vmatpush3.bf16.msra.mxu0 %v2182_v41  ;;  %v138_v41 = vand.u32 7, %v92_v39  ;;  %v117_v46 = vand.u32 7, %v2350_v31  ;;  %v3041_v31 = vmov 0 }
  0x24   :  { %1944 = vmatprep.subr.bf16.mxu0 %v2183_v47  ;;  %1958 = vmatprep.mubr.msk.bf16.mxu0 %vm2385_vm8, %v1635_v48  ;;  %v110_v48 = vand.u32 7, %v2288_v8 }
  0x25   :  { %1963 = vmatpush3.msk.msra.mxu1 %vm2435_vm11, %v2224_v9  ;;  %vm2587_vm1 = vcmp.eq.s32.totalorder %v138_v41, %v2432_v4 }
  0x26   :  { %1964 = vmatprep.subr.mxu1 %v2223_v1  ;;  %v3036_v42 = vsel %vm2587_vm1, 4294967295, %v3035_v42 }
  0x27   :  { %1945 = vmatpush3.bf16.msra.mxu0 %v2183_v47  ;;  %1965 = vmatpush3.msk.msra.mxu1 %vm2443_vm12, %v2224_v9  ;;  %v3037_v47 = vmov 0 }
  0x28   :  { %1946 = vmatprep.subr.bf16.mxu0 %v2184_v50  ;;  %1966 = vmatprep.subr.mxu1 %v2223_v1 }
  0x29   :  { %1967 = vmatpush3.msk.msra.mxu1 %vm2463_vm13, %v2224_v9 }
  0x2a   :  { %1968 = vmatprep.subr.mxu1 %v2223_v1 }
  0x2b   :  { %1947 = vmatpush3.bf16.msra.mxu0 %v2184_v50  ;;  %1969 = vmatpush3.msk.msra.mxu1 %vm2476_vm14, %v2224_v9  ;;  %v3043_v50 = vmov 0 }
  0x2c   :  { %1948 = vmatprep.subr.bf16.mxu0 %v2185_v51  ;;  %1970 = vmatprep.subr.mxu1 %v2223_v1 }
  0x2d   :  { %1971 = vmatpush3.msk.msra.mxu1 %vm2490_vm15, %v2224_v9 }
  0x2e   :  { %1972 = vmatprep.subr.mxu1 %v2223_v1 }
  0x2f   :  { %1949 = vmatpush3.bf16.msra.mxu0 %v2185_v51  ;;  %1973 = vmatpush3.msk.msra.mxu1 %vm2504_vm0, %v2224_v9 }
  0x30   :  { %1950 = vmatprep.subr.bf16.mxu0 %v2186_v52  ;;  %1974 = vmatprep.subr.mxu1 %v2223_v1 }
  0x31   :  { %1975 = vmatpush3.msk.msra.mxu1 %vm2518_vm2, %v2224_v9 }
  0x32   :  { %1976 = vmatprep.subr.mxu1 %v2223_v1 }
  0x33   :  { %1951 = vmatpush3.bf16.msra.mxu0 %v2186_v52  ;;  %1977 = vmatpush3.msk.msra.mxu1 %vm2532_vm5, %v2224_v9 }
  0x34   :  { %1952 = vmatprep.subr.bf16.mxu0 %v2187_v53  ;;  %1978 = vmatprep.subr.mxu1 %v2223_v1 }
  0x35   :  { %1979 = vmatpush3.msk.msra.mxu1 %vm2546_vm6, %v2224_v9 }
  0x36   :  { %1980 = vmatprep.subr.mxu1 %v2223_v1 }
  0x37   :  { %1953 = vmatpush3.bf16.msra.mxu0 %v2187_v53  ;;  %1981 = vmatpush3.msk.msra.mxu1 %vm2560_vm9, %v2224_v9 }
  0x38   :  { %1954 = vmatprep.subr.bf16.mxu0 %v2188_v54  ;;  %1982 = vmatprep.subr.mxu1 %v2223_v1 }
  0x39   :  { %1983 = vmatpush3.msk.msra.mxu1 %vm2574_vm4, %v2224_v9 }
  0x3a   :  { %1984 = vmatprep.subr.mxu1 %v2223_v1 }
  0x3b   :  { %1955 = vmatpush3.bf16.msra.mxu0 %v2188_v54  ;;  %1985 = vmatpush3.msk.msra.mxu1 %vm2587_vm1, %v2224_v9 }
  0x3c   :  { %1956 = vmatprep.subr.bf16.mxu0 %v2189_v57  ;;  %1986 = vmatprep.subr.mxu1 %v2223_v1 }
  0x3f   :  { %1957 = vmatpush3.bf16.msra.mxu0 %v2189_v57 }
  0x40   :  { %1997 = vmatprep.subr.mxu0 %v2223_v1 }
  0x42   :  { %1959 = vmatmul.mubr.msk.bf16.vlgmr.msra.gmra.mxu0 %vm2421_vm10, %v1638_v61  ;;  %vm2603_vm10 = vcmp.eq.s32.totalorder %v131_v43, %v2432_v4 }
  0x43   :  { %1998 = vmatpush3.msk.msra.mxu0 %vm2435_vm11, %v2224_v9  ;;  %v3038_v47 = vsel %vm2603_vm10, 4294967295, %v3037_v47  ;;  %1987 = vmatpush3.msk.msra.mxu1 %vm2603_vm10, %v2224_v9 }
  0x44   :  { %1999 = vmatprep.subr.mxu0 %v2223_v1  ;;  %1988 = vmatprep.subr.mxu1 %v2223_v1 }
  0x45   :  { %2000 = vmatpush3.msk.msra.mxu0 %vm2443_vm12, %v2224_v9 }
  0x46   :  { %2001 = vmatprep.subr.mxu0 %v2223_v1 }
  0x47   :  { %2002 = vmatpush3.msk.msra.mxu0 %vm2463_vm13, %v2224_v9 }
  0x48   :  { %2003 = vmatprep.subr.mxu0 %v2223_v1 }
  0x49   :  { %2004 = vmatpush3.msk.msra.mxu0 %vm2476_vm14, %v2224_v9 }
  0x4a   :  { %2005 = vmatprep.subr.mxu0 %v2223_v1 }
  0x4b   :  { %2006 = vmatpush3.msk.msra.mxu0 %vm2490_vm15, %v2224_v9 }
  0x4c   :  { %2007 = vmatprep.subr.mxu0 %v2223_v1 }
  0x4d   :  { %2008 = vmatpush3.msk.msra.mxu0 %vm2504_vm0, %v2224_v9 }
  0x4e   :  { %2009 = vmatprep.subr.mxu0 %v2223_v1 }
  0x4f   :  { %2010 = vmatpush3.msk.msra.mxu0 %vm2518_vm2, %v2224_v9 }
  0x50   :  { %2011 = vmatprep.subr.mxu0 %v2223_v1 }
  0x51   :  { %2012 = vmatpush3.msk.msra.mxu0 %vm2532_vm5, %v2224_v9 }
  0x52   :  { %2013 = vmatprep.subr.mxu0 %v2223_v1 }
  0x53   :  { %2014 = vmatpush3.msk.msra.mxu0 %vm2546_vm6, %v2224_v9 }
  0x54   :  { %2015 = vmatprep.subr.mxu0 %v2223_v1 }
  0x55   :  { %2016 = vmatpush3.msk.msra.mxu0 %vm2560_vm9, %v2224_v9  ;;  %vm2614_vm9 = vcmp.eq.s32.totalorder %v124_v44, %v2432_v4 }
  0x56   :  { %2017 = vmatprep.subr.mxu0 %v2223_v1  ;;  %v3040_v23 = vsel %vm2614_vm9, 4294967295, %v3039_v23  ;;  %1989 = vmatpush3.msk.msra.mxu1 %vm2614_vm9, %v2224_v9 }
  0x57   :  { %2018 = vmatpush3.msk.msra.mxu0 %vm2574_vm4, %v2224_v9  ;;  %vm2989_vm4 = vmmov 0   ;;  %1990 = vmatprep.subr.mxu1 %v2223_v1 }
  0x58   :  { %2019 = vmatprep.subr.mxu0 %v2223_v1  ;;  %1994 = vmatprep.mubr.msk.f32.mxu1 %vm2989_vm4, %v2223_v1  ;;  %vm2634_vm4 = vcmp.eq.s32.totalorder %v110_v48, %v2432_v4 }
  0x59   :  { %2020 = vmatpush3.msk.msra.mxu0 %vm2587_vm1, %v2224_v9  ;;  %vm2621_vm1 = vcmp.eq.s32.totalorder %v117_v46, %v2432_v4  ;;  %v3044_v50 = vsel %vm2634_vm4, 4294967295, %v3043_v50 }
  0x5a   :  { %2021 = vmatprep.subr.mxu0 %v2223_v1  ;;  %v3042_v31 = vsel %vm2621_vm1, 4294967295, %v3041_v31  ;;  %1991 = vmatpush3.msk.msra.mxu1 %vm2621_vm1, %v2224_v9 }
  0x5b   :  { %2022 = vmatpush3.msk.msra.mxu0 %vm2603_vm10, %v2224_v9  ;;  %1992 = vmatprep.subr.mxu1 %v2223_v1 }
  0x5c   :  { %2023 = vmatprep.subr.mxu0 %v2223_v1  ;;  %1993 = vmatpush3.msk.msra.mxu1 %vm2634_vm4, %v2224_v9 }
  0x5d   :  { %2024 = vmatpush3.msk.msra.mxu0 %vm2614_vm9, %v2224_v9  ;;  %vm3045_vm9 = vmmov 0  }
  0x5e   :  { %2025 = vmatprep.subr.mxu0 %v2223_v1  ;;  %2029 = vmatprep.mubr.msk.f32.mxu0 %vm3045_vm9, %v2223_v1 }
  0x5f   :  { %2026 = vmatpush3.msk.msra.mxu0 %vm2621_vm1, %v2224_v9 }
  0x60   :  { %2027 = vmatprep.subr.mxu0 %v2223_v1 }
  0x61   :  { %2028 = vmatpush3.msk.msra.mxu0 %vm2634_vm4, %v2224_v9 }
  0xe2   :  { %v1920_v51 = vpop.f32.mrf.mxu0 }
  0xe3   :  { %v1940_v52 = vpop.f32.mrf.mxu1 }
  0xe4   :  { %v519_v53 = vpop.f32.mrf.mxu0  ;;  %v625_v3 = vadd.f32 %v1940_v52, %v1920_v51 }
  0xe5   :  { %v616_v54 = vpop.f32.mrf.mxu1 }
  0xe6   :  { %v1921_v55 = vpop.f32.mrf.mxu0  ;;  %v617_v63 = vadd.f32 %v616_v54, %v519_v53 }
  0xe7   :  { %v1941_v56 = vpop.f32.mrf.mxu1 }
  0xe8   :  { %v522_v57 = vpop.f32.mrf.mxu0  ;;  %v628_v10 = vadd.f32 %v1941_v56, %v1921_v55 }
  0xe9   :  { %v619_v59 = vpop.f32.mrf.mxu1 }
  0xea   :  { %v620_v0 = vadd.f32 %v619_v59, %v522_v57 }
 0x102   :  { %v1960_v58 = vpop.f32.mrf.mxu0 }
 0x103   :  { %v749_v11 = vadd.f32 %v1960_v58, %v625_v3  ;;  %v2194_v3 = vld [vmem:[%s2974_s2 + $0x68] sm:$0xff]  }
 0x104   :  { %v732_v60 = vpop.f32.mrf.mxu0 }
 0x105   :  { %v747_v4 = vadd.f32 %v732_v60, %v617_v63  ;;  %v2191_v63 = vld [vmem:[%s2974_s2 + $0x38] sm:$0xff]  }
 0x106   :  { %v1961_v61 = vpop.f32.mrf.mxu0  ;;  %2032 = vmatprep.subr.bf16.mxu1 %v2191_v63 }
 0x107   :  { %v750_v14 = vadd.f32 %v1961_v61, %v628_v10  ;;  %v2190_v61 = vld [vmem:[%s2974_s2 + $0x78] sm:$0xff]   ;;  %v2197_v10 = vld [vmem:[%s2974_s2 + $0x20] sm:$0xff]  }
 0x108   :  { %v735_v2 = vpop.f32.mrf.mxu0  ;;  %2052 = vmatprep.subr.bf16.mxu0 %v2190_v61 }
 0x109   :  { %v748_v6 = vadd.f32 %v735_v2, %v620_v0  ;;  %v2192_v0 = vld [vmem:[%s2974_s2 + $0x70] sm:$0xff]  }
 0x10a   :  { %v2193_v2 = vld [vmem:[%s2974_s2 + $0x30] sm:$0xff]  }
 0x10b   :  { %v753_v12 = vadd.f32 %v748_v6, %v747_v4 }
 0x10d   :  { %v754_v15 = vadd.f32 %v753_v12, %v749_v11  ;;  %v2199_v12 = vld [vmem:[%s2974_s2 + $0x18] sm:$0xff]  }
 0x10f   :  { %v755_v17 = vadd.f32 %v754_v15, %v750_v14  ;;  %v2201_v15 = vld [vmem:[%s2974_s2 + $0x10] sm:$0xff]  }
 0x111   :  { %v756_v18 = vrot.slane %v755_v17, 4 }
 0x113   :  { %v757_v20 = vadd.f32 %v756_v18, %v755_v17  ;;  %v2202_v17 = vld [vmem:[%s2974_s2 + $0x48] sm:$0xff]  }
 0x114   :  { %v2203_v18 = vld [vmem:[%s2974_s2 + $0x8] sm:$0xff]  }
 0x115   :  { %v758_v21 = vrot.slane %v757_v20, 2 }
 0x117   :  { %v759_v24 = vadd.f32 %v758_v21, %v757_v20  ;;  %v2204_v20 = vld [vmem:[%s2974_s2 + $0x40] sm:$0xff]  }
 0x118   :  { %v2205_v21 = vld [vmem:[%s2974_s2] sm:$0xff]  }
 0x119   :  { %v760_v25 = vrot.slane %v759_v24, 1 }
 0x11b   :  { %v761_v28 = vadd.f32 %v760_v25, %v759_v24  ;;  %v2206_v24 = vld [vmem:[%s2974_s2 + $0xb8] sm:$0xff]  }
 0x11d   :  { %1995 = vmatmul.mubr.f32.vlgmr.msra.gmra.mxu1 %v761_v28 }
 0x11e   :  { %2033 = vmatpush3.bf16.msra.mxu1 %v2191_v63 }
 0x11f   :  { %2034 = vmatprep.subr.bf16.mxu1 %v2193_v2 }
 0x122   :  { %2035 = vmatpush3.bf16.msra.mxu1 %v2193_v2 }
 0x1dd   :  { %v828_v32 = vpop.f32.mrf.mxu1 }
 0x1de   :  { %v832_v33 = vmul.f32 0.001953125, %v828_v32 }
 0x1df   :  { %v1996_v35 = vpop.f32.mrf.mxu1 }
 0x1e0   :  { %v836_v36 = vrot.slane %v832_v33, %v2659_v29  ;;  %v751_v35 = vld [vmem:[%s2975_s3] sm:$0x1] }
 0x1e2   :  { %v2662_v38 = vsub.f32 %v747_v4, %v836_v36  ;;  %v2664_v39 = vsub.f32 %v748_v6, %v836_v36  ;;  %v2666_v41 = vsub.f32 %v749_v11, %v836_v36  ;;  %v2668_v43 = vsub.f32 %v750_v14, %v836_v36  ;;  %v2195_v4 = vld [vmem:[%s2974_s2 + $0x28] sm:$0xff]   ;;  %v2196_v6 = vld [vmem:[%s2974_s2 + $0x60] sm:$0xff]   ;;  %v2198_v11 = vld [vmem:[%s2974_s2 + $0x58] sm:$0xff]  }
 0x1e3   :  { %2036 = vmatprep.subr.bf16.mxu1 %v2195_v4  ;;  %v2200_v14 = vld [vmem:[%s2974_s2 + $0x50] sm:$0xff]  }
 0x1e4   :  { %v841_v44 = vmul.f32 %v2662_v38, %v2662_v38  ;;  %v842_v46 = vmul.f32 %v2664_v39, %v2664_v39  ;;  %v843_v48 = vmul.f32 %v2666_v41, %v2666_v41  ;;  %v844_v52 = vmul.f32 %v2668_v43, %v2668_v43  ;;  %2037 = vmatpush3.bf16.msra.mxu1 %v2195_v4 }
 0x1e5   :  { %2038 = vmatprep.subr.bf16.mxu1 %v2197_v10 }
 0x1e6   :  { %v845_v51 = vadd.f32 %v842_v46, %v841_v44 }
 0x1e8   :  { %v846_v53 = vadd.f32 %v845_v51, %v843_v48  ;;  %2039 = vmatpush3.bf16.msra.mxu1 %v2197_v10  ;;  %v1672_v48 = vld [vmem:[%s2976_s4] ss:$0 sm:$0xff] }
 0x1e9   :  { %2040 = vmatprep.subr.bf16.mxu1 %v2199_v12 }
 0x1ea   :  { %v847_v54 = vadd.f32 %v846_v53, %v844_v52 }
 0x1ec   :  { %v848_v55 = vrot.slane %v847_v54, 4  ;;  %2041 = vmatpush3.bf16.msra.mxu1 %v2199_v12 }
 0x1ed   :  { %2042 = vmatprep.subr.bf16.mxu1 %v2201_v15 }
 0x1ee   :  { %v849_v56 = vadd.f32 %v848_v55, %v847_v54 }
 0x1f0   :  { %v850_v57 = vrot.slane %v849_v56, 2  ;;  %2043 = vmatpush3.bf16.msra.mxu1 %v2201_v15 }
 0x1f1   :  { %2044 = vmatprep.subr.bf16.mxu1 %v2203_v18 }
 0x1f2   :  { %v851_v58 = vadd.f32 %v850_v57, %v849_v56 }
 0x1f4   :  { %v852_v59 = vrot.slane %v851_v58, 1  ;;  %2045 = vmatpush3.bf16.msra.mxu1 %v2203_v18 }
 0x1f5   :  { %2046 = vmatprep.subr.bf16.mxu1 %v2205_v21 }
 0x1f6   :  { %v853_v60 = vadd.f32 %v852_v59, %v851_v58 }
 0x1f8   :  { %2030 = vmatmul.mubr.f32.vlgmr.msra.gmra.mxu0 %v853_v60  ;;  %2047 = vmatpush3.bf16.msra.mxu1 %v2205_v21 }
 0x1f9   :  { %2053 = vmatpush3.bf16.msra.mxu0 %v2190_v61  ;;  %2072 = vmatprep.subr.bf16.mxu1 %v2206_v24 }
 0x1fa   :  { %2054 = vmatprep.subr.bf16.mxu0 %v2192_v0 }
 0x1fd   :  { %2055 = vmatpush3.bf16.msra.mxu0 %v2192_v0 }
 0x1fe   :  { %2056 = vmatprep.subr.bf16.mxu0 %v2194_v3 }
 0x201   :  { %2057 = vmatpush3.bf16.msra.mxu0 %v2194_v3 }
 0x202   :  { %2058 = vmatprep.subr.bf16.mxu0 %v2196_v6 }
 0x205   :  { %2059 = vmatpush3.bf16.msra.mxu0 %v2196_v6 }
 0x206   :  { %2060 = vmatprep.subr.bf16.mxu0 %v2198_v11 }
 0x209   :  { %2061 = vmatpush3.bf16.msra.mxu0 %v2198_v11 }
 0x20a   :  { %2062 = vmatprep.subr.bf16.mxu0 %v2200_v14 }
 0x20d   :  { %2063 = vmatpush3.bf16.msra.mxu0 %v2200_v14 }
 0x20e   :  { %2064 = vmatprep.subr.bf16.mxu0 %v2202_v17 }
 0x211   :  { %2065 = vmatpush3.bf16.msra.mxu0 %v2202_v17 }
 0x212   :  { %2066 = vmatprep.subr.bf16.mxu0 %v2204_v20 }
 0x215   :  { %2067 = vmatpush3.bf16.msra.mxu0 %v2204_v20 }
 0x216   :  { %2092 = vmatprep.subr.mxu0 %v2223_v1 }
 0x2b8   :  { %v920_v25 = vpop.f32.mrf.mxu0 }
 0x2b9   :  { %v924_v28 = vmul.f32 0.001953125, %v920_v25 }
 0x2ba   :  { %v2031_v32 = vpop.f32.mrf.mxu0 }
 0x2bb   :  { %v925_v33 = vadd.f32 1e-05, %v924_v28 }
 0x2bd   :  { %2214 = vrsqrt.f32 %v925_v33  ;;  %v2207_v33 = vld [vmem:[%s2974_s2 + $0xb0] sm:$0xff]  }
 0x2ca   :  { %v2215_v36 = vpop.eup %2214 }
 0x2cb   :  { %v927_v44 = vmul.f32 %v2215_v36, %v751_v35  ;;  %v2212_v36 = vld [vmem:[%s2974_s2 + $0x88] sm:$0xff]  }
 0x2cd   :  { %v932_v46 = vrot.slane %v927_v44, %v2659_v29  ;;  %v2213_v44 = vld [vmem:[%s2974_s2 + $0x80] sm:$0xff]  }
 0x2cf   :  { %v934_v51 = vmul.f32 %v932_v46, %v2662_v38  ;;  %v935_v52 = vmul.f32 %v932_v46, %v2664_v39  ;;  %v936_v53 = vmul.f32 %v932_v46, %v2666_v41  ;;  %v937_v54 = vmul.f32 %v932_v46, %v2668_v43 }
 0x2d1   :  { %v944_v55 = vadd.f32 %v1672_v48, %v934_v51  ;;  %v945_v56 = vadd.f32 %v1672_v48, %v935_v52  ;;  %v946_v57 = vadd.f32 %v1672_v48, %v936_v53  ;;  %v947_v58 = vadd.f32 %v1672_v48, %v937_v54 }
 0x2d3   :  { %vm948_vm4 = vcmp.gt.f32.partialorder %v944_v55, 0.0  ;;  %vm949_vm1 = vcmp.gt.f32.partialorder %v945_v56, 0.0  ;;  %v952_v59 = vmul.f32 0.01, %v944_v55  ;;  %v953_v60 = vmul.f32 0.01, %v945_v56 }
 0x2d4   :  { %vm950_vm10 = vcmp.gt.f32.partialorder %v946_v57, 0.0  ;;  %vm951_vm6 = vcmp.gt.f32.partialorder %v947_v58, 0.0  ;;  %v954_v61 = vmul.f32 0.01, %v946_v57  ;;  %v955_v63 = vmul.f32 0.01, %v947_v58 }
 0x2d5   :  { %v2741_v0 = vsel %vm948_vm4, %v944_v55, %v952_v59  ;;  %v957_v38 = vsel %vm949_vm1, %v945_v56, %v953_v60  ;;  %vm3046_vm1 = vcmp.lt.s32.totalorder %v2288_v8, 1  ;;  %vm3047_vm4 = vcmp.lt.s32.totalorder %v2288_v8, 7 }
 0x2d6   :  { %v960_v39 = vrot.slane %v2741_v0, 7  ;;  %v961_v41 = vrot.slane %v957_v38, 7  ;;  %v972_v43 = vrot.slane %v2741_v0, 1  ;;  %v973_v2 = vrot.slane %v957_v38, 1  ;;  %vm3050_vm5 = vmmov %vm3046_vm1 }
 0x2d7   :  { %v984_v3 = vpack.c.bf16 %v957_v38, %v2741_v0  ;;  %v2746_v4 = vsel %vm950_vm10, %v946_v57, %v954_v61  ;;  %v2748_v6 = vsel %vm951_vm6, %v947_v58, %v955_v63  ;;  %vm3048_vm10 = vmmov %vm3046_vm1 }
 0x2d8   :  { %v962_v10 = vrot.slane %v2746_v4, 7  ;;  %v963_v11 = vrot.slane %v2748_v6, 7  ;;  %v974_v12 = vrot.slane %v2746_v4, 1  ;;  %v985_v14 = vpack.c.bf16 %v2748_v6, %v2746_v4  ;;  %vm3049_vm6 = vmmov %vm3046_vm1 }
 0x2d9   :  { %2068 = vmatprep.mubr.bf16.mxu0 %v984_v3  ;;  %v966_v15 = vsel %vm3046_vm1, %v960_v39, %v961_v41  ;;  %v978_v17 = vsel %vm3047_vm4, %v972_v43, %v973_v2  ;;  %vm3051_vm2 = vmmov %vm3047_vm4  ;;  %vm3057_vm1 = vnez %v3036_v42  ;;  %v975_v46 = vrot.slane %v2748_v6, 1 }
 0x2da   :  { %v967_v18 = vsel %vm3048_vm10, %v963_v11, %v960_v39  ;;  %v964_v20 = vsel %vm3049_vm6, %v962_v10, %v963_v11  ;;  %v965_v21 = vsel %vm3050_vm5, %v961_v41, %v962_v10  ;;  %v977_v25 = vsel %vm3051_vm2, %v973_v2, %v974_v12  ;;  %2069 = vmatmul.mubr.bf16.vlgmr.msra.gmra.mxu0 %v985_v14 }
 0x2db   :  { %v1698_v28 = vpack.c.bf16 %v966_v15, %v967_v18  ;;  %v1701_v32 = vpack.c.bf16 %v964_v20, %v965_v21  ;;  %2093 = vmatpush3.msk.msra.mxu0 %vm2435_vm11, %v2224_v9  ;;  %2124 = vmatprep.mubr.msk.f32.mxu0 %vm3045_vm9, %v2223_v1  ;;  %v1736_v35 = vpack.c.bf16 %v977_v25, %v978_v17  ;;  %vm3060_vm6 = vcmp.lt.s32.totalorder %v2288_v8, 7 }
 0x2dc   :  { %2094 = vmatprep.subr.mxu0 %v2223_v1  ;;  %vm3055_vm2 = vnez %v3032_v37  ;;  %vm3056_vm5 = vnez %v3034_v40  ;;  %vm3058_vm4 = vnez %v3038_v47  ;;  %vm3059_vm10 = vnez %v3040_v23 }
 0x2dd   :  { %2048 = vmatprep.mubr.msk.bf16.mxu1 %vm2334_vm3, %v1698_v28  ;;  %2095 = vmatpush3.msk.msra.mxu0 %vm2443_vm12, %v2224_v9  ;;  %vm3052_vm3 = vnez %v3026_v27  ;;  %v976_v48 = vsel %vm3060_vm6, %v974_v12, %v975_v46 }
 0x2de   :  { %2049 = vmatmul.mubr.msk.bf16.vlgmr.msra.gmra.mxu1 %vm2375_vm7, %v1701_v32  ;;  %2096 = vmatprep.subr.mxu0 %v2223_v1  ;;  %vm3053_vm7 = vnez %v3028_v30 }
 0x2df   :  { %2073 = vmatpush3.bf16.msra.mxu1 %v2206_v24  ;;  %2088 = vmatprep.mubr.msk.bf16.mxu1 %vm2385_vm8, %v1736_v35  ;;  %v2211_v24 = vld [vmem:[%s2974_s2 + $0x90] sm:$0xff]   ;;  %vm3054_vm8 = vnez %v3030_v34 }
 0x2e0   :  { %2074 = vmatprep.subr.bf16.mxu1 %v2207_v33  ;;  %2097 = vmatpush3.msk.msra.mxu0 %vm2463_vm13, %v2224_v9 }
 0x2e1   :  { %2098 = vmatprep.subr.mxu0 %v2223_v1 }
 0x2e2   :  { %2099 = vmatpush3.msk.msra.mxu0 %vm2476_vm14, %v2224_v9 }
 0x2e3   :  { %2075 = vmatpush3.bf16.msra.mxu1 %v2207_v33  ;;  %2100 = vmatprep.subr.mxu0 %v2223_v1 }
 0x2e4   :  { %2076 = vmatprep.subr.bf16.mxu1 %v2208_v26  ;;  %2101 = vmatpush3.msk.msra.mxu0 %vm2490_vm15, %v2224_v9 }
 0x2e5   :  { %2102 = vmatprep.subr.mxu0 %v2223_v1 }
 0x2e6   :  { %2103 = vmatpush3.msk.msra.mxu0 %vm2504_vm0, %v2224_v9 }
 0x2e7   :  { %2077 = vmatpush3.bf16.msra.mxu1 %v2208_v26  ;;  %2104 = vmatprep.subr.mxu0 %v2223_v1 }
 0x2e8   :  { %2078 = vmatprep.subr.bf16.mxu1 %v2209_v45  ;;  %2105 = vmatpush3.msk.msra.mxu0 %vm3052_vm3, %v2224_v9 }
 0x2e9   :  { %2106 = vmatprep.subr.mxu0 %v2223_v1 }
 0x2ea   :  { %2107 = vmatpush3.msk.msra.mxu0 %vm3053_vm7, %v2224_v9 }
 0x2eb   :  { %2079 = vmatpush3.bf16.msra.mxu1 %v2209_v45  ;;  %2108 = vmatprep.subr.mxu0 %v2223_v1  ;;  %v1335_v45 = vld [vmem:[%s2977_s5] sm:$0x1] }
 0x2ec   :  { %2080 = vmatprep.subr.bf16.mxu1 %v2210_v49  ;;  %2109 = vmatpush3.msk.msra.mxu0 %vm3054_vm8, %v2224_v9 }
 0x2ed   :  { %2110 = vmatprep.subr.mxu0 %v2223_v1 }
 0x2ee   :  { %2111 = vmatpush3.msk.msra.mxu0 %vm3055_vm2, %v2224_v9 }
 0x2ef   :  { %2081 = vmatpush3.bf16.msra.mxu1 %v2210_v49  ;;  %2112 = vmatprep.subr.mxu0 %v2223_v1 }
 0x2f0   :  { %2082 = vmatprep.subr.bf16.mxu1 %v2211_v24  ;;  %2113 = vmatpush3.msk.msra.mxu0 %vm3056_vm5, %v2224_v9 }
 0x2f1   :  { %2114 = vmatprep.subr.mxu0 %v2223_v1 }
 0x2f2   :  { %2115 = vmatpush3.msk.msra.mxu0 %vm3057_vm1, %v2224_v9  ;;  %vm3061_vm1 = vmmov %vm3060_vm6  ;;  %vm3064_vm6 = vnez %v3012_v62 }
 0x2f3   :  { %2083 = vmatpush3.bf16.msra.mxu1 %v2211_v24  ;;  %2116 = vmatprep.subr.mxu0 %v2223_v1  ;;  %v979_v51 = vsel %vm3061_vm1, %v975_v46, %v972_v43 }
 0x2f4   :  { %2084 = vmatprep.subr.bf16.mxu1 %v2212_v36  ;;  %2117 = vmatpush3.msk.msra.mxu0 %vm3058_vm4, %v2224_v9  ;;  %vm3062_vm4 = vnez %v3042_v31  ;;  %v1739_v52 = vpack.c.bf16 %v979_v51, %v976_v48 }
 0x2f5   :  { %2118 = vmatprep.subr.mxu0 %v2223_v1 }
 0x2f6   :  { %2119 = vmatpush3.msk.msra.mxu0 %vm3059_vm10, %v2224_v9  ;;  %vm3063_vm10 = vnez %v3044_v50 }
 0x2f7   :  { %2085 = vmatpush3.bf16.msra.mxu1 %v2212_v36  ;;  %2120 = vmatprep.subr.mxu0 %v2223_v1 }
 0x2f8   :  { %2086 = vmatprep.subr.bf16.mxu1 %v2213_v44  ;;  %2121 = vmatpush3.msk.msra.mxu0 %vm3062_vm4, %v2224_v9 }
 0x2f9   :  { %2122 = vmatprep.subr.mxu0 %v2223_v1 }
 0x2fa   :  { %2123 = vmatpush3.msk.msra.mxu0 %vm3063_vm10, %v2224_v9 }
 0x2fb   :  { %2087 = vmatpush3.bf16.msra.mxu1 %v2213_v44  ;;  %v1773_v44 = vld [vmem:[%s2978_s6] ss:$0 sm:$0xff] }
 0x2fc   :  { %2127 = vmatprep.subr.mxu1 %v2223_v1 }
 0x2fe   :  { %2089 = vmatmul.mubr.msk.bf16.vlgmr.msra.gmra.mxu1 %vm3064_vm6, %v1739_v52 }
 0x2ff   :  { %2128 = vmatpush3.msk.msra.mxu1 %vm2435_vm11, %v2224_v9  ;;  %2159 = vmatprep.mubr.msk.f32.mxu1 %vm3045_vm9, %v2223_v1  ;;  %vm3065_vm11 = vnez %v3036_v42 }
 0x300   :  { %2129 = vmatprep.subr.mxu1 %v2223_v1 }
 0x301   :  { %2130 = vmatpush3.msk.msra.mxu1 %vm2443_vm12, %v2224_v9  ;;  %vm3066_vm12 = vnez %v3038_v47 }
 0x302   :  { %2131 = vmatprep.subr.mxu1 %v2223_v1 }
 0x303   :  { %2132 = vmatpush3.msk.msra.mxu1 %vm2463_vm13, %v2224_v9  ;;  %vm3067_vm13 = vnez %v3040_v23 }
 0x304   :  { %2133 = vmatprep.subr.mxu1 %v2223_v1 }
 0x305   :  { %2134 = vmatpush3.msk.msra.mxu1 %vm2476_vm14, %v2224_v9 }
 0x306   :  { %2135 = vmatprep.subr.mxu1 %v2223_v1 }
 0x307   :  { %2136 = vmatpush3.msk.msra.mxu1 %vm2490_vm15, %v2224_v9 }
 0x308   :  { %2137 = vmatprep.subr.mxu1 %v2223_v1 }
 0x309   :  { %2138 = vmatpush3.msk.msra.mxu1 %vm2504_vm0, %v2224_v9 }
 0x30a   :  { %2139 = vmatprep.subr.mxu1 %v2223_v1 }
 0x30b   :  { %2140 = vmatpush3.msk.msra.mxu1 %vm3052_vm3, %v2224_v9 }
 0x30c   :  { %2141 = vmatprep.subr.mxu1 %v2223_v1 }
 0x30d   :  { %2142 = vmatpush3.msk.msra.mxu1 %vm3053_vm7, %v2224_v9 }
 0x30e   :  { %2143 = vmatprep.subr.mxu1 %v2223_v1 }
 0x30f   :  { %2144 = vmatpush3.msk.msra.mxu1 %vm3054_vm8, %v2224_v9 }
 0x310   :  { %2145 = vmatprep.subr.mxu1 %v2223_v1 }
 0x311   :  { %2146 = vmatpush3.msk.msra.mxu1 %vm3055_vm2, %v2224_v9 }
 0x312   :  { %2147 = vmatprep.subr.mxu1 %v2223_v1 }
 0x313   :  { %2148 = vmatpush3.msk.msra.mxu1 %vm3056_vm5, %v2224_v9 }
 0x314   :  { %2149 = vmatprep.subr.mxu1 %v2223_v1 }
 0x315   :  { %2150 = vmatpush3.msk.msra.mxu1 %vm3065_vm11, %v2224_v9 }
 0x316   :  { %2151 = vmatprep.subr.mxu1 %v2223_v1 }
 0x317   :  { %2152 = vmatpush3.msk.msra.mxu1 %vm3066_vm12, %v2224_v9 }
 0x318   :  { %2153 = vmatprep.subr.mxu1 %v2223_v1 }
 0x319   :  { %2154 = vmatpush3.msk.msra.mxu1 %vm3067_vm13, %v2224_v9 }
 0x31a   :  { %2155 = vmatprep.subr.mxu1 %v2223_v1 }
 0x31b   :  { %2156 = vmatpush3.msk.msra.mxu1 %vm3062_vm4, %v2224_v9 }
 0x31c   :  { %2157 = vmatprep.subr.mxu1 %v2223_v1 }
 0x31d   :  { %2158 = vmatpush3.msk.msra.mxu1 %vm3063_vm10, %v2224_v9 }
 0x39a   :  { %v2070_v7 = vpop.f32.mrf.mxu0 }
 0x39c   :  { %v1200_v13 = vpop.f32.mrf.mxu0 }
 0x39e   :  { %v2050_v8 = vpop.f32.mrf.mxu1  ;;  %v2071_v19 = vpop.f32.mrf.mxu0 }
 0x39f   :  { %v1209_v47 = vadd.f32 %v2070_v7, %v2050_v8 }
 0x3a0   :  { %v1103_v62 = vpop.f32.mrf.mxu1  ;;  %v1203_v30 = vpop.f32.mrf.mxu0 }
 0x3a1   :  { %v1201_v37 = vadd.f32 %v1200_v13, %v1103_v62 }
 0x3a2   :  { %v2051_v5 = vpop.f32.mrf.mxu1 }
 0x3a3   :  { %v1212_v31 = vadd.f32 %v2071_v19, %v2051_v5 }
 0x3a4   :  { %v1106_v16 = vpop.f32.mrf.mxu1 }
 0x3a5   :  { %v1204_v40 = vadd.f32 %v1203_v30, %v1106_v16 }
 0x3be   :  { %v2090_v22 = vpop.f32.mrf.mxu1 }
 0x3bf   :  { %v1333_v50 = vadd.f32 %v2090_v22, %v1209_v47 }
 0x3c0   :  { %v1316_v27 = vpop.f32.mrf.mxu1 }
 0x3c1   :  { %v1331_v1 = vadd.f32 %v1316_v27, %v1201_v37  ;;  %v2218_v37 = vld [vmem:[%s2973_s0] sm:$0xff] }
 0x3c2   :  { %v2091_v34 = vpop.f32.mrf.mxu1 }
 0x3c3   :  { %v1334_v53 = vadd.f32 %v2091_v34, %v1212_v31  ;;  %v2221_v31 = vld [vmem:[%s2973_s0 + $0x18] sm:$0xff] }
 0x3c4   :  { %v1319_v42 = vpop.f32.mrf.mxu1 }
 0x3c5   :  { %v1332_v23 = vadd.f32 %v1319_v42, %v1204_v40  ;;  %v2219_v42 = vld [vmem:[%s2973_s0 + $0x8] sm:$0xff] }
 0x3c7   :  { %v1337_v9 = vadd.f32 %v1332_v23, %v1331_v1 }
 0x3c9   :  { %v1338_v54 = vadd.f32 %v1337_v9, %v1333_v50 }
 0x3cb   :  { %v1339_v55 = vadd.f32 %v1338_v54, %v1334_v53 }
 0x3cd   :  { %v1340_v56 = vrot.slane %v1339_v55, 4 }
 0x3cf   :  { %v1341_v57 = vadd.f32 %v1340_v56, %v1339_v55 }
 0x3d1   :  { %v1342_v58 = vrot.slane %v1341_v57, 2 }
 0x3d3   :  { %v1343_v59 = vadd.f32 %v1342_v58, %v1341_v57 }
 0x3d5   :  { %v1344_v60 = vrot.slane %v1343_v59, 1 }
 0x3d7   :  { %v1345_v61 = vadd.f32 %v1344_v60, %v1343_v59 }
 0x3d9   :  { %2125 = vmatmul.mubr.f32.vlgmr.msra.gmra.mxu0 %v1345_v61 }
 0x499   :  { %v1412_v63 = vpop.f32.mrf.mxu0 }
 0x49a   :  { %v1416_v0 = vmul.f32 0.001953125, %v1412_v63 }
 0x49b   :  { %v2126_v38 = vpop.f32.mrf.mxu0 }
 0x49c   :  { %v1420_v39 = vrot.slane %v1416_v0, %v2659_v29 }
 0x49e   :  { %v1421_v41 = vsub.f32 %v1331_v1, %v1420_v39  ;;  %v1422_v43 = vsub.f32 %v1332_v23, %v1420_v39  ;;  %v1423_v2 = vsub.f32 %v1333_v50, %v1420_v39  ;;  %v1424_v3 = vsub.f32 %v1334_v53, %v1420_v39  ;;  %v2220_v1 = vld [vmem:[%s2973_s0 + $0x10] sm:$0xff] }
 0x4a0   :  { %v1425_v4 = vmul.f32 %v1421_v41, %v1421_v41  ;;  %v1426_v6 = vmul.f32 %v1422_v43, %v1422_v43  ;;  %v1427_v10 = vmul.f32 %v1423_v2, %v1423_v2  ;;  %v1428_v12 = vmul.f32 %v1424_v3, %v1424_v3 }
 0x4a2   :  { %v1429_v11 = vadd.f32 %v1426_v6, %v1425_v4 }
 0x4a4   :  { %v1430_v14 = vadd.f32 %v1429_v11, %v1427_v10 }
 0x4a6   :  { %v1431_v15 = vadd.f32 %v1430_v14, %v1428_v12 }
 0x4a8   :  { %v1432_v17 = vrot.slane %v1431_v15, 4 }
 0x4aa   :  { %v1433_v18 = vadd.f32 %v1432_v17, %v1431_v15 }
 0x4ac   :  { %v1434_v20 = vrot.slane %v1433_v18, 2 }
 0x4ae   :  { %v1435_v21 = vadd.f32 %v1434_v20, %v1433_v18 }
 0x4b0   :  { %v1436_v25 = vrot.slane %v1435_v21, 1 }
 0x4b2   :  { %v1437_v28 = vadd.f32 %v1436_v25, %v1435_v21 }
 0x4b4   :  { %2160 = vmatmul.mubr.f32.vlgmr.msra.gmra.mxu1 %v1437_v28 }
 0x574   :  { %v1504_v32 = vpop.f32.mrf.mxu1 }
 0x575   :  { %v1508_v33 = vmul.f32 0.001953125, %v1504_v32 }
 0x576   :  { %v2161_v35 = vpop.f32.mrf.mxu1 }
 0x577   :  { %v1509_v26 = vadd.f32 1e-05, %v1508_v33 }
 0x579   :  { %2216 = vrsqrt.f32 %v1509_v26 }
 0x586   :  { %v2217_v49 = vpop.eup %2216 }
 0x587   :  { %v1511_v24 = vmul.f32 %v2217_v49, %v1335_v45 }
 0x589   :  { %v1516_v36 = vrot.slane %v1511_v24, %v2659_v29 }
 0x58b   :  { %v1518_v46 = vmul.f32 %v1516_v36, %v1421_v41  ;;  %v1519_v48 = vmul.f32 %v1516_v36, %v1422_v43  ;;  %v1520_v51 = vmul.f32 %v1516_v36, %v1423_v2  ;;  %v1521_v52 = vmul.f32 %v1516_v36, %v1424_v3 }
 0x58d   :  { %v1528_v8 = vadd.f32 %v1773_v44, %v1518_v46  ;;  %v1529_v62 = vadd.f32 %v1773_v44, %v1519_v48  ;;  %v1530_v7 = vadd.f32 %v1773_v44, %v1520_v51  ;;  %v1531_v5 = vadd.f32 %v1773_v44, %v1521_v52 }
 0x58f   :  { %vm1532_vm14 = vcmp.gt.f32.partialorder %v1528_v8, 0.0  ;;  %vm1533_vm15 = vcmp.gt.f32.partialorder %v1529_v62, 0.0  ;;  %vm1534_vm0 = vcmp.gt.f32.partialorder %v1530_v7, 0.0  ;;  %vm1535_vm9 = vcmp.gt.f32.partialorder %v1531_v5, 0.0 }
 0x590   :  { %v1536_v13 = vmul.f32 0.01, %v1528_v8  ;;  %v1537_v16 = vmul.f32 0.01, %v1529_v62  ;;  %v1538_v19 = vmul.f32 0.01, %v1530_v7 }
 0x591   :  { %v1539_v29 = vmul.f32 0.01, %v1531_v5 }
 0x592   :  { %v1540_v22 = vsel %vm1532_vm14, %v1528_v8, %v1536_v13  ;;  %v1541_v27 = vsel %vm1533_vm15, %v1529_v62, %v1537_v16  ;;  %v1542_v30 = vsel %vm1534_vm0, %v1530_v7, %v1538_v19 }
 0x593   :  { %v1543_v34 = vsel %vm1535_vm9, %v1531_v5, %v1539_v29  ;;  %v1544_v40 = vadd.f32 %v2218_v37, %v1540_v22  ;;  %v1545_v47 = vadd.f32 %v2219_v42, %v1541_v27  ;;  %v1546_v23 = vadd.f32 %v2220_v1, %v1542_v30 }
 0x594   :  { %v1547_v50 = vadd.f32 %v2221_v31, %v1543_v34 }
 0x595   :  { %1548 = vst [vmem:[%s2979_s7] sm:$0xff] %v1544_v40  ;;  %1549 = vst [vmem:[%s2979_s7 + $0x8] sm:$0xff] %v1545_v47 }
 0x596   :  { %1550 = vst [vmem:[%s2979_s7 + $0x10] sm:$0xff] %v1546_v23  ;;  %1551 = vst [vmem:[%s2979_s7 + $0x18] sm:$0xff] %v1547_v50 }

</bundles_post_ra>
